<compile_context>
chip_gen: v5e
topology: v5e:2x2
jax: 0.10.0
libtpu: 0.0.40
codegen_flags: <defaults>
</compile_context>

<pallas_src>
import functools
import math

import jax
import jax.numpy as jnp
from jax.experimental import pallas as pl
from jax.experimental.pallas import tpu as pltpu


def _round_up(x, m):
    return ((x + m - 1) // m) * m


def _divisor_tile(dim, max_tile, granule):
    """Largest multiple of `granule` that divides `dim` and is <= max_tile (else None)."""
    best = None
    t = granule
    lim = min(dim, max_tile)
    while t <= lim:
        if dim % t == 0:
            best = t
        t += granule
    return best


# ---- bf16-operand / f32-accumulate matmul helpers (used inside kernels) -------------

def _mm(a, b):
    return jnp.dot(a.astype(jnp.bfloat16), b.astype(jnp.bfloat16),
                   preferred_element_type=jnp.float32)


def _mm_nt(a, b):
    """a @ b.T (contract the last dims)."""
    return jax.lax.dot_general(a.astype(jnp.bfloat16), b.astype(jnp.bfloat16),
                               (((1,), (1,)), ((), ())),
                               preferred_element_type=jnp.float32)


def _mm_tn(a, b):
    """a.T @ b (contract the first dims)."""
    return jax.lax.dot_general(a.astype(jnp.bfloat16), b.astype(jnp.bfloat16),
                               (((0,), (0,)), ((), ())),
                               preferred_element_type=jnp.float32)


# ----------------------------------------------------------------------------
# Tiled matmul kernel (bf16 MXU operands, f32 accumulator scratch)
# ----------------------------------------------------------------------------

def matmul_kernel(x_ref, w_ref, o_ref, acc_ref):
    @pl.when(pl.program_id(2) == 0)
    def _():
        acc_ref[...] = jnp.zeros_like(acc_ref)

    acc_ref[...] += jnp.dot(x_ref[...].astype(jnp.bfloat16),
                            w_ref[...].astype(jnp.bfloat16),
                            preferred_element_type=jnp.float32)

    @pl.when(pl.program_id(2) == pl.num_programs(2) - 1)
    def _():
        o_ref[...] = acc_ref[...].astype(o_ref.dtype)


def pallas_matmul(x, w, out_dtype=None, tm_max=256, tn_max=512, tk_max=512):
    """x: [M, K] @ w: [K, N].  Picks tiles that divide the real dims (no runtime pad in
    the common 8/128-aligned cases); ragged dims fall back to a full-extent tile."""
    M, K = x.shape
    K2, N = w.shape
    assert K == K2
    out_dtype = out_dtype or x.dtype

    tm = _divisor_tile(M, tm_max, 8)
    if tm is None:                                  # ragged M: pad rows (rare)
        Mp = _round_up(M, 8)
        x = jnp.pad(x, ((0, Mp - M), (0, 0)))
        tm = _divisor_tile(Mp, tm_max, 8)
    else:
        Mp = M
    tk = _divisor_tile(K, tk_max, 128) if K % 128 == 0 else K
    tn = _divisor_tile(N, tn_max, 128) if N % 128 == 0 else N

    out = pl.pallas_call(
        matmul_kernel,
        out_shape=jax.ShapeDtypeStruct((Mp, N), out_dtype),
        grid=(Mp // tm, N // tn, K // tk),
        in_specs=[
            pl.BlockSpec((tm, tk), lambda i, j, k: (i, k)),
            pl.BlockSpec((tk, tn), lambda i, j, k: (k, j)),
        ],
        out_specs=pl.BlockSpec((tm, tn), lambda i, j, k: (i, j)),
        scratch_shapes=[pltpu.VMEM((tm, tn), jnp.float32)],
        compiler_params=pltpu.CompilerParams(
            dimension_semantics=("parallel", "parallel", "arbitrary")),
    )(x, w)
    return out if Mp == M else out[:M]


# ----------------------------------------------------------------------------
# Depthwise causal short conv (kernel K) + SiLU, time-tiled with a halo carry
# ----------------------------------------------------------------------------

def conv_silu_kernel(x_ref, w_ref, o_ref, halo_ref, *, K):
    """x_ref: [1, tt, td]; w_ref: [K, td]; o_ref: [1, tt, td];
    halo_ref: VMEM [K-1, td] scratch carrying the previous tile's last rows
    (causal left pad folded into the kernel — no jnp.pad pass over HBM)."""
    t = pl.program_id(2)

    @pl.when(t == 0)
    def _():
        halo_ref[...] = jnp.zeros_like(halo_ref)

    x_raw = x_ref[0]                                     # [tt, td]
    tt = x_raw.shape[0]
    w = w_ref[...].astype(jnp.float32)
    if K > 1:
        xfull = jnp.concatenate(
            [halo_ref[...].astype(jnp.float32), x_raw.astype(jnp.float32)], axis=0)
    else:
        xfull = x_raw.astype(jnp.float32)
    acc = jnp.zeros((tt, x_raw.shape[1]), jnp.float32)
    for j in range(K):                                   # static unroll over the taps
        acc = acc + xfull[j:j + tt, :] * w[j:j + 1, :]
    o_ref[0] = (acc * jax.nn.sigmoid(acc)).astype(o_ref.dtype)
    if K > 1:
        halo_ref[...] = x_raw[tt - (K - 1):, :]          # raw rows become next tile's halo


def short_conv_silu(x, w, n_channels, time_tile=512):
    """x: [B, T, C_in] (only the first n_channels are convolved / written);
    w: [K, n_channels] with w[j, d] == torch_conv_weight[d, 0, j]."""
    B, T, _ = x.shape
    K = w.shape[0]

    if n_channels % 256 == 0:
        td = 256
    elif n_channels % 128 == 0:
        td = 128
    else:
        td = n_channels
    tt = None
    for cand in (time_tile, 256, 128, 64, 32, 16, 8):
        if cand <= T and T % cand == 0 and cand >= max(K - 1, 1):
            tt = cand
            break
    if tt is None:
        tt = T
    assert tt >= K - 1 or K == 1

    return pl.pallas_call(
        functools.partial(conv_silu_kernel, K=K),
        out_shape=jax.ShapeDtypeStruct((B, T, n_channels), x.dtype),
        grid=(B, n_channels // td, T // tt),
        in_specs=[
            pl.BlockSpec((1, tt, td), lambda b, d, t: (b, t, d)),
            pl.BlockSpec((K, td), lambda b, d, t: (0, d)),
        ],
        out_specs=pl.BlockSpec((1, tt, td), lambda b, d, t: (b, t, d)),
        scratch_shapes=[pltpu.VMEM((max(K - 1, 1), td), x.dtype)],
        compiler_params=pltpu.CompilerParams(
            dimension_semantics=("parallel", "parallel", "arbitrary")),
    )(x, w)


# ----------------------------------------------------------------------------
# Chunked (WY / UT-transform) gated delta-product rule
# ----------------------------------------------------------------------------

def _unit_lower_solve(A, rhs, n_steps):
    """(I + A)^{-1} @ rhs via Neumann doubling; A strictly lower [m, m] f32, rhs [m, n]."""
    m = A.shape[0]
    rows = jax.lax.broadcasted_iota(jnp.int32, (m, m), 0)
    cols = jax.lax.broadcasted_iota(jnp.int32, (m, m), 1)
    T = (rows == cols).astype(jnp.float32) - A
    P = -A
    for _ in range(n_steps):                 # log-depth, bf16 MXU matmuls / f32 accumulate
        P = _mm(P, P)
        T = T + _mm(P, T)
    return _mm(T, rhs)


def _process_chunk(q, k, v, beta, bk_col, bk_row, bq_col, S0, *, scale, nh, nblk):
    """One chunk (Ct tokens, Ck = Ct*nh key slots) of the gated delta-product rule.
    All inputs f32: q [Ct,Dk], k [Ck,Dk], v [Ck,Dv], beta/bk_col [Ck,1], bk_row [1,Ck],
    bq_col [Ct,1], S0 [Dk,Dv].  Returns (o [Ct,Dv], S_new [Dk,Dv]) in f32."""
    Ct = q.shape[0]
    Ck = k.shape[0]

    # l2-normalise q/k (use_qk_l2norm_in_kernel=True); scale folded into q.
    q = q * jax.lax.rsqrt(jnp.sum(q * q, -1, keepdims=True) + 1e-6) * scale
    k = k * jax.lax.rsqrt(jnp.sum(k * k, -1, keepdims=True) + 1e-6)

    # pseudo-value RHS: beta*v - beta*exp(bk)*k @ S0   (exp(bk) <= 1, bounded)
    w_dec = k * (beta * jnp.exp(bk_col))
    rhs = beta * v - _mm(w_dec, S0)

    # blocked forward substitution for u = (I + A)^{-1} rhs,
    # A[p, s] = beta_p * exp(bk_p - bk_s) * (k_p . k_s),  s < p (strictly lower).
    m = Ck // nblk
    n_steps = max(0, math.ceil(math.log2(max(m, 2))) - 1)
    rows = jax.lax.broadcasted_iota(jnp.int32, (m, m), 0)
    cols = jax.lax.broadcasted_iota(jnp.int32, (m, m), 1)
    strict = rows > cols
    u_parts = []
    for bi in range(nblk):
        r0, r1 = bi * m, (bi + 1) * m
        k_i, beta_i, bkc_i = k[r0:r1], beta[r0:r1], bk_col[r0:r1]
        rhs_i = rhs[r0:r1]
        for bj in range(bi):                           # off-diagonal correction (no mask)
            c0, c1 = bj * m, (bj + 1) * m
            A_ij = beta_i * _mm_nt(k_i, k[c0:c1]) * jnp.exp(bkc_i - bk_row[:, c0:c1])
            rhs_i = rhs_i - _mm(A_ij, u_parts[bj])
        dec_ii = jnp.exp(jnp.where(strict, bkc_i - bk_row[:, r0:r1], -1e30))
        A_ii = beta_i * _mm_nt(k_i, k_i) * dec_ii      # exactly strictly lower
        u_parts.append(_unit_lower_solve(A_ii, rhs_i, n_steps))
    u = u_parts[0] if nblk == 1 else jnp.concatenate(u_parts, axis=0)      # [Ck, Dv]

    # outputs only at the token (query) positions, after all nh updates of that token
    t_rows = jax.lax.broadcasted_iota(jnp.int32, (Ct, Ck), 0)
    s_cols = jax.lax.broadcasted_iota(jnp.int32, (Ct, Ck), 1)
    vis = s_cols < (t_rows + 1) * nh
    attn = _mm_nt(q, k) * jnp.exp(jnp.where(vis, bq_col - bk_row, -1e30))
    o = _mm(q * jnp.exp(bq_col), S0) + _mm(attn, u)

    # chunk-end state
    b_last = bq_col[Ct - 1:Ct, :]
    k_dec = k * jnp.exp(b_last - bk_col)
    S_new = jnp.exp(b_last) * S0 + _mm_tn(k_dec, u)
    return o, S_new


def chunk_delta_kernel(q_ref, k_ref, v_ref, beta_ref, bkc_ref, bkr_ref, bqc_ref,
                       o_ref, S_ref, *, scale, nh, ncs, Ct, nblk):
    """Processes `ncs` chunks per grid step (static unroll); the [Dk, Dv] f32 state is
    carried in VMEM scratch across the "arbitrary" chunk-group grid axis."""
    c = pl.program_id(1)

    @pl.when(c == 0)
    def _():
        S_ref[...] = jnp.zeros_like(S_ref)

    Ck = Ct * nh
    for cc in range(ncs):
        q = q_ref[0, cc * Ct:(cc + 1) * Ct, :].astype(jnp.float32)
        k = k_ref[0, cc * Ck:(cc + 1) * Ck, :].astype(jnp.float32)
        v = v_ref[0, cc * Ck:(cc + 1) * Ck, :].astype(jnp.float32)
        beta = beta_ref[0, cc * Ck:(cc + 1) * Ck, :].astype(jnp.float32)
        bk_col = bkc_ref[0, cc * Ck:(cc + 1) * Ck, :].astype(jnp.float32)
        bq_col = bqc_ref[0, cc * Ct:(cc + 1) * Ct, :].astype(jnp.float32)
        bk_row = bkr_ref[0, pl.ds(c * ncs + cc, 1), :].astype(jnp.float32)   # [1, Ck]
        o, S_new = _process_chunk(q, k, v, beta, bk_col, bk_row, bq_col, S_ref[...],
                                  scale=scale, nh=nh, nblk=nblk)
        S_ref[...] = S_new
        o_ref[0, cc * Ct:(cc + 1) * Ct, :] = o.astype(o_ref.dtype)


def gated_delta_rule_chunked(q, k, v, g, beta, *, nh, chunk_tokens=64, chunks_per_step=2):
    """q: [B,H,T,Dk]; k: [B,H,L,Dk]; v: [B,H,L,Dv]; g: [B,H,T]; beta: [B,H,L]; L = T*nh.
    Returns o: [B,H,T,Dv] (readout at the last householder slot of each token)."""
    B, H, T, Dk = q.shape
    Dv = v.shape[-1]
    scale = Dk ** -0.5

    Ct = min(chunk_tokens, _round_up(T, 8))
    Tp = _round_up(T, Ct)
    NC = Tp // Ct
    Ck = Ct * nh
    Lp = Tp * nh

    pad_t = Tp - T
    pad_l = Lp - T * nh
    if pad_t:
        q = jnp.pad(q, ((0, 0), (0, 0), (0, pad_t), (0, 0)))
        g = jnp.pad(g, ((0, 0), (0, 0), (0, pad_t)))
    if pad_l:
        k = jnp.pad(k, ((0, 0), (0, 0), (0, pad_l), (0, 0)))
        v = jnp.pad(v, ((0, 0), (0, 0), (0, pad_l), (0, 0)))
        beta = jnp.pad(beta, ((0, 0), (0, 0), (0, pad_l)))

    # per-chunk inclusive cumulative gate sums (tiny tensors; plain JAX glue)
    g = g.astype(jnp.float32)
    bq = jnp.cumsum(g.reshape(B, H, NC, Ct), axis=-1)                       # [B,H,NC,Ct]
    bk = jnp.broadcast_to(bq[..., None], (B, H, NC, Ct, nh))                # slots share token gate

    BH = B * H
    q_r = q.reshape(BH, Tp, Dk)
    k_r = k.reshape(BH, Lp, Dk)
    v_r = v.reshape(BH, Lp, Dv)
    beta_r = beta.reshape(BH, Lp, 1)
    bkc_r = bk.reshape(BH, Lp, 1)
    bkr_r = bk.reshape(BH, NC, Ck)          # lane-dense per-chunk row of key gates
    bqc_r = bq.reshape(BH, Tp, 1)

    ncs = 1
    for cand in range(min(chunks_per_step, NC), 0, -1):
        if NC % cand == 0:
            ncs = cand
            break
    nblk = 2 if (Ck >= 16 and Ck % 16 == 0) else 1

    kernel = functools.partial(chunk_delta_kernel, scale=scale, nh=nh,
                               ncs=ncs, Ct=Ct, nblk=nblk)

    o = pl.pallas_call(
        kernel,
        out_shape=jax.ShapeDtypeStruct((BH, Tp, Dv), q.dtype),
        grid=(BH, NC // ncs),
        in_specs=[
            pl.BlockSpec((1, Ct * ncs, Dk), lambda i, c: (i, c, 0)),
            pl.BlockSpec((1, Ck * ncs, Dk), lambda i, c: (i, c, 0)),
            pl.BlockSpec((1, Ck * ncs, Dv), lambda i, c: (i, c, 0)),
            pl.BlockSpec((1, Ck * ncs, 1), lambda i, c: (i, c, 0)),
            pl.BlockSpec((1, Ck * ncs, 1), lambda i, c: (i, c, 0)),
            pl.BlockSpec((1, NC, Ck), lambda i, c: (i, 0, 0)),
            pl.BlockSpec((1, Ct * ncs, 1), lambda i, c: (i, c, 0)),
        ],
        out_specs=pl.BlockSpec((1, Ct * ncs, Dv), lambda i, c: (i, c, 0)),
        scratch_shapes=[pltpu.VMEM((Dk, Dv), jnp.float32)],
        compiler_params=pltpu.CompilerParams(
            dimension_semantics=("parallel", "arbitrary")),
    )(q_r, k_r, v_r, beta_r, bkc_r, bkr_r, bqc_r)

    o = o.reshape(B, H, Tp, Dv)
    return o if pad_t == 0 else o[:, :, :T, :]


# ----------------------------------------------------------------------------
# Fused RMSNorm + swish gate, row-tiled
# ----------------------------------------------------------------------------

def rmsnorm_swish_gate_kernel(x_ref, g_ref, w_ref, o_ref, *, eps):
    x = x_ref[...].astype(jnp.float32)
    g = g_ref[...].astype(jnp.float32)
    w = w_ref[...].astype(jnp.float32)
    xn = x * jax.lax.rsqrt(jnp.mean(x * x, axis=-1, keepdims=True) + eps)
    o_ref[...] = ((xn * w) * (g * jax.nn.sigmoid(g))).astype(o_ref.dtype)


def rmsnorm_swish_gate(x, g, w, eps, block_rows=512):
    """x, g: [N, D]; w: [1, D]. FusedRMSNormSwishGate: rmsnorm(x)*w * g*sigmoid(g)."""
    Nr, D = x.shape
    tr = _divisor_tile(Nr, block_rows, 8)
    if tr is None:
        Np = _round_up(Nr, 8)
        x = jnp.pad(x, ((0, Np - Nr), (0, 0)))
        g = jnp.pad(g, ((0, Np - Nr), (0, 0)))
        tr = _divisor_tile(Np, block_rows, 8)
    else:
        Np = Nr
    out = pl.pallas_call(
        functools.partial(rmsnorm_swish_gate_kernel, eps=eps),
        out_shape=jax.ShapeDtypeStruct((Np, D), x.dtype),
        grid=(Np // tr,),
        in_specs=[
            pl.BlockSpec((tr, D), lambda i: (i, 0)),
            pl.BlockSpec((tr, D), lambda i: (i, 0)),
            pl.BlockSpec((1, D), lambda i: (0, 0)),
        ],
        out_specs=pl.BlockSpec((tr, D), lambda i: (i, 0)),
        compiler_params=pltpu.CompilerParams(dimension_semantics=("parallel",)),
    )(x, g, w)
    return out if Np == Nr else out[:Nr]


# ----------------------------------------------------------------------------
# Pure-JAX sequential reference (self-check of the chunked kernel)
# ----------------------------------------------------------------------------

def _delta_rule_reference(q, k, v, g, beta, nh):
    B, H, T, Dk = q.shape
    Dv = v.shape[-1]
    scale = Dk ** -0.5
    qn = q * jax.lax.rsqrt(jnp.sum(q * q, -1, keepdims=True) + 1e-6) * scale
    kn = k * jax.lax.rsqrt(jnp.sum(k * k, -1, keepdims=True) + 1e-6)
    kn = kn.reshape(B, H, T, nh, Dk)
    vv = v.reshape(B, H, T, nh, Dv)
    bb = beta.reshape(B, H, T, nh)

    def step(S, xs):
        k_t, v_t, b_t, g_t, q_t = xs
        S = S * jnp.exp(g_t)[..., None, None]
        for i in range(nh):
            ki = k_t[:, :, i]
            kv = jnp.einsum('bhk,bhkv->bhv', ki, S)
            u = (v_t[:, :, i] - kv) * b_t[:, :, i][..., None]
            S = S + jnp.einsum('bhk,bhv->bhkv', ki, u)
        return S, jnp.einsum('bhk,bhkv->bhv', q_t, S)

    xs = (kn.transpose(2, 0, 1, 3, 4), vv.transpose(2, 0, 1, 3, 4),
          bb.transpose(2, 0, 1, 3), g.transpose(2, 0, 1), qn.transpose(2, 0, 1, 3))
    _, os = jax.lax.scan(step, jnp.zeros((B, H, Dk, Dv), jnp.float32), xs)
    return os.transpose(1, 2, 0, 3)


# ----------------------------------------------------------------------------
# Parameter init (deterministic, mirrors module __init__ shapes) + one-time packing
# ----------------------------------------------------------------------------

def xavier_uniform(key, fan_in, fan_out, gain):
    bound = gain * math.sqrt(6.0 / (fan_in + fan_out))
    return jax.random.uniform(key, (fan_in, fan_out), jnp.float32, -bound, bound)


def init_params(key, hidden, head_dim, num_heads, num_householder, expand_v, conv_size):
    key_dim = num_heads * head_dim
    value_dim = int(key_dim * expand_v)
    head_v_dim = int(head_dim * expand_v)
    gain = 2.0 ** (-2.5)
    ks = jax.random.split(key, 8 + 6 * num_householder)
    it = iter(range(len(ks)))

    p = {}
    p["W_q"] = xavier_uniform(ks[next(it)], hidden, key_dim, gain)
    p["W_k"] = [xavier_uniform(ks[next(it)], hidden, key_dim, gain) for _ in range(num_householder)]
    p["W_v"] = [xavier_uniform(ks[next(it)], hidden, value_dim, gain) for _ in range(num_householder)]
    p["W_b"] = [xavier_uniform(ks[next(it)], hidden, num_heads, gain) for _ in range(num_householder)]
    p["W_a"] = xavier_uniform(ks[next(it)], hidden, num_heads, gain)
    p["W_g"] = xavier_uniform(ks[next(it)], hidden, value_dim, gain)
    p["W_o"] = xavier_uniform(ks[next(it)], value_dim, hidden, gain)

    cb = 1.0 / math.sqrt(conv_size)
    p["conv_q"] = jax.random.uniform(ks[next(it)], (conv_size, key_dim), jnp.float32, -cb, cb)
    p["conv_k"] = [jax.random.uniform(ks[next(it)], (conv_size, key_dim), jnp.float32, -cb, cb)
                   for _ in range(num_householder)]
    p["conv_v"] = [jax.random.uniform(ks[next(it)], (conv_size, value_dim), jnp.float32, -cb, cb)
                   for _ in range(num_householder)]

    ka, kd = jax.random.split(ks[-1])
    A = jax.random.uniform(ka, (num_heads,), jnp.float32, 0.0, 16.0)
    p["A_log"] = jnp.log(A)
    dt = jnp.exp(jax.random.uniform(kd, (num_heads,), jnp.float32)
                 * (math.log(0.1) - math.log(0.001)) + math.log(0.001))
    dt = jnp.maximum(dt, 1e-4)
    p["dt_bias"] = dt + jnp.log(-jnp.expm1(-dt))
    p["o_norm_w"] = jnp.ones((1, head_v_dim), jnp.float32)
    return p


def prepare_params(p):
    """One-time weight packing (run OUTSIDE the per-step jit): fused projection matrix
    (lane-padded to a 128 multiple so no runtime pad pass), fused conv taps, bf16 casts."""
    W_all = jnp.concatenate(
        [p["W_q"]] + list(p["W_k"]) + list(p["W_v"]) +
        list(p["W_b"]) + [p["W_a"], p["W_g"]], axis=1)
    n_all = W_all.shape[1]
    W_all = jnp.pad(W_all, ((0, 0), (0, _round_up(n_all, 128) - n_all)))
    conv_w_all = jnp.concatenate(
        [p["conv_q"]] + list(p["conv_k"]) + list(p["conv_v"]), axis=1)
    return {
        "W_all": W_all.astype(jnp.bfloat16),
        "conv_w_all": conv_w_all.astype(jnp.bfloat16),
        "W_o": p["W_o"].astype(jnp.bfloat16),
        "A_log": p["A_log"],
        "dt_bias": p["dt_bias"],
        "o_norm_w": p["o_norm_w"],
    }


# ----------------------------------------------------------------------------
# Forward pass (GatedDeltaProduct, training/chunk path, no cache, no mask)
# ----------------------------------------------------------------------------

def gated_delta_product_forward(params, x, *, head_dim, num_heads, num_householder,
                                expand_v, norm_eps=1e-5, chunk_tokens=64,
                                chunks_per_step=2):
    B, T, hidden = x.shape
    H = num_heads
    nh = num_householder
    Dk = head_dim
    Dv = int(head_dim * expand_v)
    key_dim = H * Dk
    value_dim = H * Dv
    c_conv = key_dim * (1 + nh) + value_dim * nh
    n_all = c_conv + nh * H + H + value_dim

    # --- one fused projection matmul for [q, k_0.., v_0.., b_0.., a, g] (bf16 MXU) ---
    x2d = x.reshape(B * T, hidden).astype(jnp.bfloat16)
    proj = pallas_matmul(x2d, params["W_all"], out_dtype=jnp.bfloat16)
    proj3 = proj.reshape(B, T, -1)

    # --- fused depthwise causal conv + SiLU (halo-carried, no left-pad HBM pass) ---
    # TODO(synk): fusing the conv into the projection-matmul epilogue would also remove
    # the proj -> conv HBM round-trip.
    conv_in = proj3 if c_conv % 128 == 0 else proj3[..., :c_conv]
    conv_out = short_conv_silu(conv_in, params["conv_w_all"], n_channels=c_conv)

    beta_raw = proj3[..., c_conv:c_conv + nh * H].astype(jnp.float32)
    a = proj3[..., c_conv + nh * H:c_conv + nh * H + H].astype(jnp.float32)
    g_gate = proj3[..., c_conv + nh * H + H:n_all]                       # [B,T,value_dim] bf16
    beta = jax.nn.sigmoid(beta_raw)                                      # [B,T,nh*H]
    g_tok = -jnp.exp(params["A_log"])[None, None, :] * \
        jax.nn.softplus(a + params["dt_bias"][None, None, :])            # [B,T,H] f32

    # --- householder interleave is a free reshape of the fused channel layout; one fused
    # slice+transpose per tensor presents per-head last-dim arrays to the delta kernel ---
    # TODO(synk): a fully transpose-free path would read the [B,T,nh,H,D] layout directly
    # via 4-D/5-D BlockSpecs; kept per-(b*h) arrays here for robust Mosaic lowering.
    q_bh = conv_out[..., :key_dim].reshape(B, T, H, Dk).transpose(0, 2, 1, 3)
    k_bh = conv_out[..., key_dim:key_dim * (1 + nh)] \
        .reshape(B, T, nh, H, Dk).transpose(0, 3, 1, 2, 4).reshape(B, H, T * nh, Dk)
    v_bh = conv_out[..., key_dim * (1 + nh):c_conv] \
        .reshape(B, T, nh, H, Dv).transpose(0, 3, 1, 2, 4).reshape(B, H, T * nh, Dv)
    beta_bh = beta.reshape(B, T, nh, H).transpose(0, 3, 1, 2).reshape(B, H, T * nh)
    g_bh = g_tok.transpose(0, 2, 1)                                      # [B,H,T]

    o = gated_delta_rule_chunked(q_bh, k_bh, v_bh, g_bh, beta_bh, nh=nh,
                                 chunk_tokens=chunk_tokens,
                                 chunks_per_step=chunks_per_step)        # [B,H,T,Dv] bf16
    o = o.transpose(0, 2, 1, 3)                                          # [B,T,H,Dv]

    # --- fused RMSNorm + swish gate (use_gate=True), then output projection ---
    o_n = rmsnorm_swish_gate(o.reshape(B * T * H, Dv),
                             g_gate.reshape(B * T * H, Dv),
                             params["o_norm_w"], norm_eps)
    out = pallas_matmul(o_n.reshape(B * T, value_dim), params["W_o"],
                        out_dtype=jnp.float32)
    return out.reshape(B, T, hidden)


# ----------------------------------------------------------------------------

if __name__ == "__main__":
    B, T = 2, 8
    hidden = 32
    head_dim = 16
    num_heads = 2
    num_householder = 2
    expand_v = 2
    conv_size = 4

    key = jax.random.PRNGKey(0)
    pkey, xkey, tkey = jax.random.split(key, 3)
    raw_params = init_params(pkey, hidden, head_dim, num_heads, num_householder,
                             expand_v, conv_size)
    params = prepare_params(raw_params)
    x = jax.random.normal(xkey, (B, T, hidden), jnp.float32)

    # Self-check: chunked Pallas delta rule vs a plain-JAX sequential recurrence
    # (exercises cross-step state carry, the in-step multi-chunk loop, the blocked solve
    # and the bf16-operand MXU path).
    kk_ = jax.random.split(tkey, 5)
    Bt, Ht, Tt, Dkt, Dvt = 2, 2, 32, 16, 32
    nh_t = num_householder
    Lt = Tt * nh_t
    q_t = jax.random.normal(kk_[0], (Bt, Ht, Tt, Dkt), jnp.float32)
    k_t = jax.random.normal(kk_[1], (Bt, Ht, Lt, Dkt), jnp.float32)
    v_t = jax.random.normal(kk_[2], (Bt, Ht, Lt, Dvt), jnp.float32)
    g_t = -jnp.abs(jax.random.normal(kk_[3], (Bt, Ht, Tt), jnp.float32)) * 0.5
    b_t = jax.nn.sigmoid(jax.random.normal(kk_[4], (Bt, Ht, Lt), jnp.float32))
    o_pl = gated_delta_rule_chunked(q_t, k_t, v_t, g_t, b_t, nh=nh_t,
                                    chunk_tokens=8, chunks_per_step=2)
    o_ref = _delta_rule_reference(q_t, k_t, v_t, g_t, b_t, nh_t)
    err = float(jnp.max(jnp.abs(o_pl - o_ref)))
    assert err < 5e-2, f"chunked delta rule mismatch vs sequential reference: {err}"

    fwd = jax.jit(functools.partial(
        gated_delta_product_forward,
        head_dim=head_dim, num_heads=num_heads,
        num_householder=num_householder, expand_v=expand_v))
    out = fwd(params, x)
    jax.block_until_ready(out)
    assert out.shape == (B, T, hidden), out.shape
    assert bool(jnp.all(jnp.isfinite(out)))
    # TODO(synk): cache (past_key_values) / attention_mask / cu_seqlens paths are not
    # implemented (training/chunk forward only).
    print("KERNEL_OK")
</pallas_src>

<mosaic_0001>
module attributes {stable_mosaic.version = 11 : i64} {
  func.func @chunk_delta_kernel(%arg0: i32, %arg1: i32, %arg2: memref<1x16x16xf32, #tpu.memory_space<vmem>>, %arg3: memref<1x32x16xf32, #tpu.memory_space<vmem>>, %arg4: memref<1x32x32xf32, #tpu.memory_space<vmem>>, %arg5: memref<1x32x1xf32, #tpu.memory_space<vmem>>, %arg6: memref<1x32x1xf32, #tpu.memory_space<vmem>>, %arg7: memref<1x4x16xf32, #tpu.memory_space<vmem>>, %arg8: memref<1x16x1xf32, #tpu.memory_space<vmem>>, %arg9: memref<1x16x32xf32, #tpu.memory_space<vmem>>, %arg10: memref<16x32xf32, #tpu.memory_space<vmem>>) attributes {dimension_semantics = [#tpu.dimension_semantics<parallel>, #tpu.dimension_semantics<arbitrary>], iteration_bounds = array<i64: 4, 2>, scalar_prefetch = 0 : i64, scratch_operands = 1 : i64, tpu.core_type = #tpu.core_type<tc>, window_params = [{transform_indices = @transform_0, window_bounds = array<i64: 1, 16, 16>}, {transform_indices = @transform_1, window_bounds = array<i64: 1, 32, 16>}, {transform_indices = @transform_2, window_bounds = array<i64: 1, 32, 32>}, {transform_indices = @transform_3, window_bounds = array<i64: 1, 32, 1>}, {transform_indices = @transform_4, window_bounds = array<i64: 1, 32, 1>}, {transform_indices = @transform_5, window_bounds = array<i64: 1, 4, 16>}, {transform_indices = @transform_6, window_bounds = array<i64: 1, 16, 1>}, {transform_indices = @transform_7, window_bounds = array<i64: 1, 16, 32>}]} {
    %c0_i32 = arith.constant 0 : i32
    %0 = arith.cmpi eq, %arg1, %c0_i32 : i32
    %1 = arith.extui %0 : i1 to i32
    %c0_i32_0 = arith.constant 0 : i32
    %2 = arith.cmpi ne, %1, %c0_i32_0 : i32
    scf.if %2 {
      %cst_115 = arith.constant 0.000000e+00 : f32
      %391 = vector.broadcast %cst_115 : f32 to vector<16x32xf32>
      %c0_116 = arith.constant 0 : index
      %c0_117 = arith.constant 0 : index
      %392 = vector.load %arg10[%c0_116, %c0_117] : memref<16x32xf32, #tpu.memory_space<vmem>>, vector<16x32xf32>
      tpu.vector_store %arg10[%c0_116, %c0_117], %391 {strides = array<i32>} : memref<16x32xf32, #tpu.memory_space<vmem>>, vector<16x32xf32>,
    } else {
    }
    %c0 = arith.constant 0 : index
    %c0_1 = arith.constant 0 : index
    %c0_2 = arith.constant 0 : index
    %3 = vector.load %arg2[%c0, %c0_1, %c0_2] : memref<1x16x16xf32, #tpu.memory_space<vmem>>, vector<1x8x16xf32>
    %4 = vector.shape_cast %3 : vector<1x8x16xf32> to vector<8x16xf32>
    %c0_3 = arith.constant 0 : index
    %c0_4 = arith.constant 0 : index
    %c0_5 = arith.constant 0 : index
    %5 = vector.load %arg3[%c0_3, %c0_4, %c0_5] : memref<1x32x16xf32, #tpu.memory_space<vmem>>, vector<1x16x16xf32>
    %6 = vector.shape_cast %5 : vector<1x16x16xf32> to vector<16x16xf32>
    %c0_6 = arith.constant 0 : index
    %c0_7 = arith.constant 0 : index
    %c0_8 = arith.constant 0 : index
    %7 = vector.load %arg4[%c0_6, %c0_7, %c0_8] : memref<1x32x32xf32, #tpu.memory_space<vmem>>, vector<1x16x32xf32>
    %8 = vector.shape_cast %7 : vector<1x16x32xf32> to vector<16x32xf32>
    %c0_9 = arith.constant 0 : index
    %c0_10 = arith.constant 0 : index
    %c0_11 = arith.constant 0 : index
    %9 = vector.load %arg5[%c0_9, %c0_10, %c0_11] : memref<1x32x1xf32, #tpu.memory_space<vmem>>, vector<1x16x1xf32>
    %10 = vector.shape_cast %9 : vector<1x16x1xf32> to vector<16x1xf32>
    %c0_12 = arith.constant 0 : index
    %c0_13 = arith.constant 0 : index
    %c0_14 = arith.constant 0 : index
    %11 = vector.load %arg6[%c0_12, %c0_13, %c0_14] : memref<1x32x1xf32, #tpu.memory_space<vmem>>, vector<1x16x1xf32>
    %12 = vector.shape_cast %11 : vector<1x16x1xf32> to vector<16x1xf32>
    %c0_15 = arith.constant 0 : index
    %c0_16 = arith.constant 0 : index
    %c0_17 = arith.constant 0 : index
    %13 = vector.load %arg8[%c0_15, %c0_16, %c0_17] : memref<1x16x1xf32, #tpu.memory_space<vmem>>, vector<1x8x1xf32>
    %14 = vector.shape_cast %13 : vector<1x8x1xf32> to vector<8x1xf32>
    %c2_i32 = arith.constant 2 : i32
    %15 = arith.muli %arg1, %c2_i32 : i32
    %c0_i32_18 = arith.constant 0 : i32
    %16 = arith.addi %15, %c0_i32_18 : i32
    %c0_19 = arith.constant 0 : index
    %17 = arith.index_cast %16 : i32 to index
    %c0_20 = arith.constant 0 : index
    %18 = vector.load %arg7[%c0_19, %17, %c0_20] : memref<1x4x16xf32, #tpu.memory_space<vmem>>, vector<1x1x16xf32>
    %19 = vector.shape_cast %18 : vector<1x1x16xf32> to vector<1x16xf32>
    %c0_21 = arith.constant 0 : index
    %c0_22 = arith.constant 0 : index
    %20 = vector.load %arg10[%c0_21, %c0_22] : memref<16x32xf32, #tpu.memory_space<vmem>>, vector<16x32xf32>
    %21 = arith.mulf %4, %4 : vector<8x16xf32>
    %cst = arith.constant dense<0.000000e+00> : vector<8xf32>
    %22 = vector.multi_reduction <add>, %21, %cst [1] : vector<8x16xf32> to vector<8xf32>
    %23 = vector.shape_cast %22 : vector<8xf32> to vector<8x1xf32>
    %cst_23 = arith.constant 9.99999997E-7 : f32
    %24 = vector.broadcast %cst_23 : f32 to vector<8x1xf32>
    %25 = arith.addf %23, %24 : vector<8x1xf32>
    %26 = math.rsqrt %25 : vector<8x1xf32>
    %27 = vector.broadcast %26 : vector<8x1xf32> to vector<8x16xf32>
    %28 = arith.mulf %4, %27 : vector<8x16xf32>
    %cst_24 = arith.constant 2.500000e-01 : f32
    %29 = vector.broadcast %cst_24 : f32 to vector<8x16xf32>
    %30 = arith.mulf %28, %29 : vector<8x16xf32>
    %31 = arith.mulf %6, %6 : vector<16x16xf32>
    %cst_25 = arith.constant dense<0.000000e+00> : vector<16xf32>
    %32 = vector.multi_reduction <add>, %31, %cst_25 [1] : vector<16x16xf32> to vector<16xf32>
    %33 = vector.shape_cast %32 : vector<16xf32> to vector<16x1xf32>
    %cst_26 = arith.constant 9.99999997E-7 : f32
    %34 = vector.broadcast %cst_26 : f32 to vector<16x1xf32>
    %35 = arith.addf %33, %34 : vector<16x1xf32>
    %36 = math.rsqrt %35 : vector<16x1xf32>
    %37 = vector.broadcast %36 : vector<16x1xf32> to vector<16x16xf32>
    %38 = arith.mulf %6, %37 : vector<16x16xf32>
    %39 = math.exp %12 : vector<16x1xf32>
    %40 = arith.mulf %10, %39 : vector<16x1xf32>
    %41 = vector.broadcast %40 : vector<16x1xf32> to vector<16x16xf32>
    %42 = arith.mulf %38, %41 : vector<16x16xf32>
    %43 = vector.broadcast %10 : vector<16x1xf32> to vector<16x32xf32>
    %44 = arith.mulf %43, %8 : vector<16x32xf32>
    %45 = arith.truncf %42 : vector<16x16xf32> to vector<16x16xbf16>
    %46 = arith.truncf %20 : vector<16x32xf32> to vector<16x32xbf16>
    %cst_27 = arith.constant dense<0.000000e+00> : vector<16x32xf32>
    %47 = tpu.matmul %45, %46, %cst_27 {dimension_numbers = #tpu.dot_dimension_numbers<[1], [0], [0], [1], [0, 0, 1, 1], [], []>} : vector<16x16xbf16>, vector<16x32xbf16>, vector<16x32xf32> -> vector<16x32xf32>
    %48 = arith.subf %44, %47 : vector<16x32xf32>
    %49 = tpu.iota {dimensions = array<i32: 0>} : vector<8x8xi32>
    %50 = tpu.iota {dimensions = array<i32: 1>} : vector<8x8xi32>
    %51 = arith.cmpi sgt, %49, %50 : vector<8x8xi32>
    %52 = vector.extract_strided_slice %38 {offsets = [0, 0], sizes = [8, 16], strides = [1, 1]} : vector<16x16xf32> to vector<8x16xf32>
    %53 = vector.extract_strided_slice %10 {offsets = [0, 0], sizes = [8, 1], strides = [1, 1]} : vector<16x1xf32> to vector<8x1xf32>
    %54 = vector.extract_strided_slice %12 {offsets = [0, 0], sizes = [8, 1], strides = [1, 1]} : vector<16x1xf32> to vector<8x1xf32>
    %55 = vector.extract_strided_slice %48 {offsets = [0, 0], sizes = [8, 32], strides = [1, 1]} : vector<16x32xf32> to vector<8x32xf32>
    %56 = vector.extract_strided_slice %19 {offsets = [0, 0], sizes = [1, 8], strides = [1, 1]} : vector<1x16xf32> to vector<1x8xf32>
    %57 = vector.broadcast %54 : vector<8x1xf32> to vector<8x8xf32>
    %58 = vector.broadcast %56 : vector<1x8xf32> to vector<8x8xf32>
    %59 = arith.subf %57, %58 : vector<8x8xf32>
    %cst_28 = arith.constant -1.000000e+30 : f32
    %60 = vector.broadcast %cst_28 : f32 to vector<8x8xf32>
    %61 = arith.select %51, %59, %60 : vector<8x8xi1>, vector<8x8xf32>
    %62 = math.exp %61 : vector<8x8xf32>
    %63 = arith.truncf %52 : vector<8x16xf32> to vector<8x16xbf16>
    %64 = arith.truncf %52 : vector<8x16xf32> to vector<8x16xbf16>
    %cst_29 = arith.constant dense<0.000000e+00> : vector<8x8xf32>
    %65 = tpu.matmul %63, %64, %cst_29 {dimension_numbers = #tpu.dot_dimension_numbers<[1], [1], [0], [0], [0, 0, 1, 0], [], []>} : vector<8x16xbf16>, vector<8x16xbf16>, vector<8x8xf32> -> vector<8x8xf32>
    %66 = vector.broadcast %53 : vector<8x1xf32> to vector<8x8xf32>
    %67 = arith.mulf %66, %65 : vector<8x8xf32>
    %68 = arith.mulf %67, %62 : vector<8x8xf32>
    %69 = tpu.iota {dimensions = array<i32: 0>} : vector<8x8xi32>
    %70 = tpu.iota {dimensions = array<i32: 1>} : vector<8x8xi32>
    %71 = arith.cmpi eq, %69, %70 : vector<8x8xi32>
    %72 = arith.extui %71 : vector<8x8xi1> to vector<8x8xi32>
    %73 = arith.sitofp %72 : vector<8x8xi32> to vector<8x8xf32>
    %74 = arith.subf %73, %68 : vector<8x8xf32>
    %cst_30 = arith.constant 0.000000e+00 : f32
    %75 = vector.broadcast %cst_30 : f32 to vector<8x8xf32>
    %76 = arith.subf %75, %68 : vector<8x8xf32>
    %77 = arith.truncf %76 : vector<8x8xf32> to vector<8x8xbf16>
    %78 = arith.truncf %76 : vector<8x8xf32> to vector<8x8xbf16>
    %cst_31 = arith.constant dense<0.000000e+00> : vector<8x8xf32>
    %79 = tpu.matmul %77, %78, %cst_31 {dimension_numbers = #tpu.dot_dimension_numbers<[1], [0], [0], [1], [0, 0, 1, 1], [], []>} : vector<8x8xbf16>, vector<8x8xbf16>, vector<8x8xf32> -> vector<8x8xf32>
    %80 = arith.truncf %79 : vector<8x8xf32> to vector<8x8xbf16>
    %81 = arith.truncf %74 : vector<8x8xf32> to vector<8x8xbf16>
    %cst_32 = arith.constant dense<0.000000e+00> : vector<8x8xf32>
    %82 = tpu.matmul %80, %81, %cst_32 {dimension_numbers = #tpu.dot_dimension_numbers<[1], [0], [0], [1], [0, 0, 1, 1], [], []>} : vector<8x8xbf16>, vector<8x8xbf16>, vector<8x8xf32> -> vector<8x8xf32>
    %83 = arith.addf %74, %82 : vector<8x8xf32>
    %84 = arith.truncf %79 : vector<8x8xf32> to vector<8x8xbf16>
    %85 = arith.truncf %79 : vector<8x8xf32> to vector<8x8xbf16>
    %cst_33 = arith.constant dense<0.000000e+00> : vector<8x8xf32>
    %86 = tpu.matmul %84, %85, %cst_33 {dimension_numbers = #tpu.dot_dimension_numbers<[1], [0], [0], [1], [0, 0, 1, 1], [], []>} : vector<8x8xbf16>, vector<8x8xbf16>, vector<8x8xf32> -> vector<8x8xf32>
    %87 = arith.truncf %86 : vector<8x8xf32> to vector<8x8xbf16>
    %88 = arith.truncf %83 : vector<8x8xf32> to vector<8x8xbf16>
    %cst_34 = arith.constant dense<0.000000e+00> : vector<8x8xf32>
    %89 = tpu.matmul %87, %88, %cst_34 {dimension_numbers = #tpu.dot_dimension_numbers<[1], [0], [0], [1], [0, 0, 1, 1], [], []>} : vector<8x8xbf16>, vector<8x8xbf16>, vector<8x8xf32> -> vector<8x8xf32>
    %90 = arith.addf %83, %89 : vector<8x8xf32>
    %91 = arith.truncf %90 : vector<8x8xf32> to vector<8x8xbf16>
    %92 = arith.truncf %55 : vector<8x32xf32> to vector<8x32xbf16>
    %cst_35 = arith.constant dense<0.000000e+00> : vector<8x32xf32>
    %93 = tpu.matmul %91, %92, %cst_35 {dimension_numbers = #tpu.dot_dimension_numbers<[1], [0], [0], [1], [0, 0, 1, 1], [], []>} : vector<8x8xbf16>, vector<8x32xbf16>, vector<8x32xf32> -> vector<8x32xf32>
    %94 = vector.extract_strided_slice %38 {offsets = [8, 0], sizes = [8, 16], strides = [1, 1]} : vector<16x16xf32> to vector<8x16xf32>
    %95 = vector.extract_strided_slice %10 {offsets = [8, 0], sizes = [8, 1], strides = [1, 1]} : vector<16x1xf32> to vector<8x1xf32>
    %96 = vector.extract_strided_slice %12 {offsets = [8, 0], sizes = [8, 1], strides = [1, 1]} : vector<16x1xf32> to vector<8x1xf32>
    %97 = vector.extract_strided_slice %48 {offsets = [8, 0], sizes = [8, 32], strides = [1, 1]} : vector<16x32xf32> to vector<8x32xf32>
    %98 = vector.extract_strided_slice %38 {offsets = [0, 0], sizes = [8, 16], strides = [1, 1]} : vector<16x16xf32> to vector<8x16xf32>
    %99 = arith.truncf %94 : vector<8x16xf32> to vector<8x16xbf16>
    %100 = arith.truncf %98 : vector<8x16xf32> to vector<8x16xbf16>
    %cst_36 = arith.constant dense<0.000000e+00> : vector<8x8xf32>
    %101 = tpu.matmul %99, %100, %cst_36 {dimension_numbers = #tpu.dot_dimension_numbers<[1], [1], [0], [0], [0, 0, 1, 0], [], []>} : vector<8x16xbf16>, vector<8x16xbf16>, vector<8x8xf32> -> vector<8x8xf32>
    %102 = vector.broadcast %95 : vector<8x1xf32> to vector<8x8xf32>
    %103 = arith.mulf %102, %101 : vector<8x8xf32>
    %104 = vector.extract_strided_slice %19 {offsets = [0, 0], sizes = [1, 8], strides = [1, 1]} : vector<1x16xf32> to vector<1x8xf32>
    %105 = vector.broadcast %96 : vector<8x1xf32> to vector<8x8xf32>
    %106 = vector.broadcast %104 : vector<1x8xf32> to vector<8x8xf32>
    %107 = arith.subf %105, %106 : vector<8x8xf32>
    %108 = math.exp %107 : vector<8x8xf32>
    %109 = arith.mulf %103, %108 : vector<8x8xf32>
    %110 = arith.truncf %109 : vector<8x8xf32> to vector<8x8xbf16>
    %111 = arith.truncf %93 : vector<8x32xf32> to vector<8x32xbf16>
    %cst_37 = arith.constant dense<0.000000e+00> : vector<8x32xf32>
    %112 = tpu.matmul %110, %111, %cst_37 {dimension_numbers = #tpu.dot_dimension_numbers<[1], [0], [0], [1], [0, 0, 1, 1], [], []>} : vector<8x8xbf16>, vector<8x32xbf16>, vector<8x32xf32> -> vector<8x32xf32>
    %113 = arith.subf %97, %112 : vector<8x32xf32>
    %114 = vector.extract_strided_slice %19 {offsets = [0, 8], sizes = [1, 8], strides = [1, 1]} : vector<1x16xf32> to vector<1x8xf32>
    %115 = vector.broadcast %96 : vector<8x1xf32> to vector<8x8xf32>
    %116 = vector.broadcast %114 : vector<1x8xf32> to vector<8x8xf32>
    %117 = arith.subf %115, %116 : vector<8x8xf32>
    %cst_38 = arith.constant -1.000000e+30 : f32
    %118 = vector.broadcast %cst_38 : f32 to vector<8x8xf32>
    %119 = arith.select %51, %117, %118 : vector<8x8xi1>, vector<8x8xf32>
    %120 = math.exp %119 : vector<8x8xf32>
    %121 = arith.truncf %94 : vector<8x16xf32> to vector<8x16xbf16>
    %122 = arith.truncf %94 : vector<8x16xf32> to vector<8x16xbf16>
    %cst_39 = arith.constant dense<0.000000e+00> : vector<8x8xf32>
    %123 = tpu.matmul %121, %122, %cst_39 {dimension_numbers = #tpu.dot_dimension_numbers<[1], [1], [0], [0], [0, 0, 1, 0], [], []>} : vector<8x16xbf16>, vector<8x16xbf16>, vector<8x8xf32> -> vector<8x8xf32>
    %124 = vector.broadcast %95 : vector<8x1xf32> to vector<8x8xf32>
    %125 = arith.mulf %124, %123 : vector<8x8xf32>
    %126 = arith.mulf %125, %120 : vector<8x8xf32>
    %127 = tpu.iota {dimensions = array<i32: 0>} : vector<8x8xi32>
    %128 = tpu.iota {dimensions = array<i32: 1>} : vector<8x8xi32>
    %129 = arith.cmpi eq, %127, %128 : vector<8x8xi32>
    %130 = arith.extui %129 : vector<8x8xi1> to vector<8x8xi32>
    %131 = arith.sitofp %130 : vector<8x8xi32> to vector<8x8xf32>
    %132 = arith.subf %131, %126 : vector<8x8xf32>
    %cst_40 = arith.constant 0.000000e+00 : f32
    %133 = vector.broadcast %cst_40 : f32 to vector<8x8xf32>
    %134 = arith.subf %133, %126 : vector<8x8xf32>
    %135 = arith.truncf %134 : vector<8x8xf32> to vector<8x8xbf16>
    %136 = arith.truncf %134 : vector<8x8xf32> to vector<8x8xbf16>
    %cst_41 = arith.constant dense<0.000000e+00> : vector<8x8xf32>
    %137 = tpu.matmul %135, %136, %cst_41 {dimension_numbers = #tpu.dot_dimension_numbers<[1], [0], [0], [1], [0, 0, 1, 1], [], []>} : vector<8x8xbf16>, vector<8x8xbf16>, vector<8x8xf32> -> vector<8x8xf32>
    %138 = arith.truncf %137 : vector<8x8xf32> to vector<8x8xbf16>
    %139 = arith.truncf %132 : vector<8x8xf32> to vector<8x8xbf16>
    %cst_42 = arith.constant dense<0.000000e+00> : vector<8x8xf32>
    %140 = tpu.matmul %138, %139, %cst_42 {dimension_numbers = #tpu.dot_dimension_numbers<[1], [0], [0], [1], [0, 0, 1, 1], [], []>} : vector<8x8xbf16>, vector<8x8xbf16>, vector<8x8xf32> -> vector<8x8xf32>
    %141 = arith.addf %132, %140 : vector<8x8xf32>
    %142 = arith.truncf %137 : vector<8x8xf32> to vector<8x8xbf16>
    %143 = arith.truncf %137 : vector<8x8xf32> to vector<8x8xbf16>
    %cst_43 = arith.constant dense<0.000000e+00> : vector<8x8xf32>
    %144 = tpu.matmul %142, %143, %cst_43 {dimension_numbers = #tpu.dot_dimension_numbers<[1], [0], [0], [1], [0, 0, 1, 1], [], []>} : vector<8x8xbf16>, vector<8x8xbf16>, vector<8x8xf32> -> vector<8x8xf32>
    %145 = arith.truncf %144 : vector<8x8xf32> to vector<8x8xbf16>
    %146 = arith.truncf %141 : vector<8x8xf32> to vector<8x8xbf16>
    %cst_44 = arith.constant dense<0.000000e+00> : vector<8x8xf32>
    %147 = tpu.matmul %145, %146, %cst_44 {dimension_numbers = #tpu.dot_dimension_numbers<[1], [0], [0], [1], [0, 0, 1, 1], [], []>} : vector<8x8xbf16>, vector<8x8xbf16>, vector<8x8xf32> -> vector<8x8xf32>
    %148 = arith.addf %141, %147 : vector<8x8xf32>
    %149 = arith.truncf %148 : vector<8x8xf32> to vector<8x8xbf16>
    %150 = arith.truncf %113 : vector<8x32xf32> to vector<8x32xbf16>
    %cst_45 = arith.constant dense<0.000000e+00> : vector<8x32xf32>
    %151 = tpu.matmul %149, %150, %cst_45 {dimension_numbers = #tpu.dot_dimension_numbers<[1], [0], [0], [1], [0, 0, 1, 1], [], []>} : vector<8x8xbf16>, vector<8x32xbf16>, vector<8x32xf32> -> vector<8x32xf32>
    %152 = tpu.concatenate %93, %151 in 0 : vector<8x32xf32>, vector<8x32xf32> -> vector<16x32xf32>
    %153 = tpu.iota {dimensions = array<i32: 0>} : vector<8x16xi32>
    %154 = tpu.iota {dimensions = array<i32: 1>} : vector<8x16xi32>
    %c1_i32 = arith.constant 1 : i32
    %155 = vector.broadcast %c1_i32 : i32 to vector<8x16xi32>
    %156 = arith.addi %153, %155 : vector<8x16xi32>
    %c2_i32_46 = arith.constant 2 : i32
    %157 = vector.broadcast %c2_i32_46 : i32 to vector<8x16xi32>
    %158 = arith.muli %156, %157 : vector<8x16xi32>
    %159 = arith.cmpi slt, %154, %158 : vector<8x16xi32>
    %160 = arith.truncf %30 : vector<8x16xf32> to vector<8x16xbf16>
    %161 = arith.truncf %38 : vector<16x16xf32> to vector<16x16xbf16>
    %cst_47 = arith.constant dense<0.000000e+00> : vector<8x16xf32>
    %162 = tpu.matmul %160, %161, %cst_47 {dimension_numbers = #tpu.dot_dimension_numbers<[1], [1], [0], [0], [0, 0, 1, 0], [], []>} : vector<8x16xbf16>, vector<16x16xbf16>, vector<8x16xf32> -> vector<8x16xf32>
    %163 = vector.broadcast %14 : vector<8x1xf32> to vector<8x16xf32>
    %164 = vector.broadcast %19 : vector<1x16xf32> to vector<8x16xf32>
    %165 = arith.subf %163, %164 : vector<8x16xf32>
    %cst_48 = arith.constant -1.000000e+30 : f32
    %166 = vector.broadcast %cst_48 : f32 to vector<8x16xf32>
    %167 = arith.select %159, %165, %166 : vector<8x16xi1>, vector<8x16xf32>
    %168 = math.exp %167 : vector<8x16xf32>
    %169 = arith.mulf %162, %168 : vector<8x16xf32>
    %170 = math.exp %14 : vector<8x1xf32>
    %171 = vector.broadcast %170 : vector<8x1xf32> to vector<8x16xf32>
    %172 = arith.mulf %30, %171 : vector<8x16xf32>
    %173 = arith.truncf %172 : vector<8x16xf32> to vector<8x16xbf16>
    %174 = arith.truncf %20 : vector<16x32xf32> to vector<16x32xbf16>
    %cst_49 = arith.constant dense<0.000000e+00> : vector<8x32xf32>
    %175 = tpu.matmul %173, %174, %cst_49 {dimension_numbers = #tpu.dot_dimension_numbers<[1], [0], [0], [1], [0, 0, 1, 1], [], []>} : vector<8x16xbf16>, vector<16x32xbf16>, vector<8x32xf32> -> vector<8x32xf32>
    %176 = arith.truncf %169 : vector<8x16xf32> to vector<8x16xbf16>
    %177 = arith.truncf %152 : vector<16x32xf32> to vector<16x32xbf16>
    %cst_50 = arith.constant dense<0.000000e+00> : vector<8x32xf32>
    %178 = tpu.matmul %176, %177, %cst_50 {dimension_numbers = #tpu.dot_dimension_numbers<[1], [0], [0], [1], [0, 0, 1, 1], [], []>} : vector<8x16xbf16>, vector<16x32xbf16>, vector<8x32xf32> -> vector<8x32xf32>
    %179 = arith.addf %175, %178 : vector<8x32xf32>
    %180 = vector.extract_strided_slice %14 {offsets = [7, 0], sizes = [1, 1], strides = [1, 1]} : vector<8x1xf32> to vector<1x1xf32>
    %181 = vector.broadcast %180 : vector<1x1xf32> to vector<16x1xf32>
    %182 = arith.subf %181, %12 : vector<16x1xf32>
    %183 = math.exp %182 : vector<16x1xf32>
    %184 = vector.broadcast %183 : vector<16x1xf32> to vector<16x16xf32>
    %185 = arith.mulf %38, %184 : vector<16x16xf32>
    %186 = math.exp %180 : vector<1x1xf32>
    %187 = vector.broadcast %186 : vector<1x1xf32> to vector<16x32xf32>
    %188 = arith.mulf %187, %20 : vector<16x32xf32>
    %189 = arith.truncf %185 : vector<16x16xf32> to vector<16x16xbf16>
    %190 = arith.truncf %152 : vector<16x32xf32> to vector<16x32xbf16>
    %cst_51 = arith.constant dense<0.000000e+00> : vector<16x32xf32>
    %191 = tpu.matmul %189, %190, %cst_51 {dimension_numbers = #tpu.dot_dimension_numbers<[0], [0], [1], [1], [0, 1, 1, 1], [], []>} : vector<16x16xbf16>, vector<16x32xbf16>, vector<16x32xf32> -> vector<16x32xf32>
    %192 = arith.addf %188, %191 : vector<16x32xf32>
    %c0_52 = arith.constant 0 : index
    %c0_53 = arith.constant 0 : index
    %193 = vector.load %arg10[%c0_52, %c0_53] : memref<16x32xf32, #tpu.memory_space<vmem>>, vector<16x32xf32>
    tpu.vector_store %arg10[%c0_52, %c0_53], %192 {strides = array<i32>} : memref<16x32xf32, #tpu.memory_space<vmem>>, vector<16x32xf32>,
    %c0_54 = arith.constant 0 : index
    %c0_55 = arith.constant 0 : index
    %c0_56 = arith.constant 0 : index
    %194 = vector.load %arg9[%c0_54, %c0_55, %c0_56] : memref<1x16x32xf32, #tpu.memory_space<vmem>>, vector<1x8x32xf32>
    %195 = vector.shape_cast %194 : vector<1x8x32xf32> to vector<8x32xf32>
    %196 = vector.shape_cast %179 : vector<8x32xf32> to vector<1x8x32xf32>
    tpu.vector_store %arg9[%c0_54, %c0_55, %c0_56], %196 {strides = array<i32>} : memref<1x16x32xf32, #tpu.memory_space<vmem>>, vector<1x8x32xf32>,
    %c0_57 = arith.constant 0 : index
    %c8 = arith.constant 8 : index
    %c0_58 = arith.constant 0 : index
    %197 = vector.load %arg2[%c0_57, %c8, %c0_58] : memref<1x16x16xf32, #tpu.memory_space<vmem>>, vector<1x8x16xf32>
    %198 = vector.shape_cast %197 : vector<1x8x16xf32> to vector<8x16xf32>
    %c0_59 = arith.constant 0 : index
    %c16 = arith.constant 16 : index
    %c0_60 = arith.constant 0 : index
    %199 = vector.load %arg3[%c0_59, %c16, %c0_60] : memref<1x32x16xf32, #tpu.memory_space<vmem>>, vector<1x16x16xf32>
    %200 = vector.shape_cast %199 : vector<1x16x16xf32> to vector<16x16xf32>
    %c0_61 = arith.constant 0 : index
    %c16_62 = arith.constant 16 : index
    %c0_63 = arith.constant 0 : index
    %201 = vector.load %arg4[%c0_61, %c16_62, %c0_63] : memref<1x32x32xf32, #tpu.memory_space<vmem>>, vector<1x16x32xf32>
    %202 = vector.shape_cast %201 : vector<1x16x32xf32> to vector<16x32xf32>
    %c0_64 = arith.constant 0 : index
    %c16_65 = arith.constant 16 : index
    %c0_66 = arith.constant 0 : index
    %203 = vector.load %arg5[%c0_64, %c16_65, %c0_66] : memref<1x32x1xf32, #tpu.memory_space<vmem>>, vector<1x16x1xf32>
    %204 = vector.shape_cast %203 : vector<1x16x1xf32> to vector<16x1xf32>
    %c0_67 = arith.constant 0 : index
    %c16_68 = arith.constant 16 : index
    %c0_69 = arith.constant 0 : index
    %205 = vector.load %arg6[%c0_67, %c16_68, %c0_69] : memref<1x32x1xf32, #tpu.memory_space<vmem>>, vector<1x16x1xf32>
    %206 = vector.shape_cast %205 : vector<1x16x1xf32> to vector<16x1xf32>
    %c0_70 = arith.constant 0 : index
    %c8_71 = arith.constant 8 : index
    %c0_72 = arith.constant 0 : index
    %207 = vector.load %arg8[%c0_70, %c8_71, %c0_72] : memref<1x16x1xf32, #tpu.memory_space<vmem>>, vector<1x8x1xf32>
    %208 = vector.shape_cast %207 : vector<1x8x1xf32> to vector<8x1xf32>
    %c2_i32_73 = arith.constant 2 : i32
    %209 = arith.muli %arg1, %c2_i32_73 : i32
    %c1_i32_74 = arith.constant 1 : i32
    %210 = arith.addi %209, %c1_i32_74 : i32
    %c0_75 = arith.constant 0 : index
    %211 = arith.index_cast %210 : i32 to index
    %c0_76 = arith.constant 0 : index
    %212 = vector.load %arg7[%c0_75, %211, %c0_76] : memref<1x4x16xf32, #tpu.memory_space<vmem>>, vector<1x1x16xf32>
    %213 = vector.shape_cast %212 : vector<1x1x16xf32> to vector<1x16xf32>
    %c0_77 = arith.constant 0 : index
    %c0_78 = arith.constant 0 : index
    %214 = vector.load %arg10[%c0_77, %c0_78] : memref<16x32xf32, #tpu.memory_space<vmem>>, vector<16x32xf32>
    %215 = arith.mulf %198, %198 : vector<8x16xf32>
    %cst_79 = arith.constant dense<0.000000e+00> : vector<8xf32>
    %216 = vector.multi_reduction <add>, %215, %cst_79 [1] : vector<8x16xf32> to vector<8xf32>
    %217 = vector.shape_cast %216 : vector<8xf32> to vector<8x1xf32>
    %cst_80 = arith.constant 9.99999997E-7 : f32
    %218 = vector.broadcast %cst_80 : f32 to vector<8x1xf32>
    %219 = arith.addf %217, %218 : vector<8x1xf32>
    %220 = math.rsqrt %219 : vector<8x1xf32>
    %221 = vector.broadcast %220 : vector<8x1xf32> to vector<8x16xf32>
    %222 = arith.mulf %198, %221 : vector<8x16xf32>
    %cst_81 = arith.constant 2.500000e-01 : f32
    %223 = vector.broadcast %cst_81 : f32 to vector<8x16xf32>
    %224 = arith.mulf %222, %223 : vector<8x16xf32>
    %225 = arith.mulf %200, %200 : vector<16x16xf32>
    %cst_82 = arith.constant dense<0.000000e+00> : vector<16xf32>
    %226 = vector.multi_reduction <add>, %225, %cst_82 [1] : vector<16x16xf32> to vector<16xf32>
    %227 = vector.shape_cast %226 : vector<16xf32> to vector<16x1xf32>
    %cst_83 = arith.constant 9.99999997E-7 : f32
    %228 = vector.broadcast %cst_83 : f32 to vector<16x1xf32>
    %229 = arith.addf %227, %228 : vector<16x1xf32>
    %230 = math.rsqrt %229 : vector<16x1xf32>
    %231 = vector.broadcast %230 : vector<16x1xf32> to vector<16x16xf32>
    %232 = arith.mulf %200, %231 : vector<16x16xf32>
    %233 = math.exp %206 : vector<16x1xf32>
    %234 = arith.mulf %204, %233 : vector<16x1xf32>
    %235 = vector.broadcast %234 : vector<16x1xf32> to vector<16x16xf32>
    %236 = arith.mulf %232, %235 : vector<16x16xf32>
    %237 = vector.broadcast %204 : vector<16x1xf32> to vector<16x32xf32>
    %238 = arith.mulf %237, %202 : vector<16x32xf32>
    %239 = arith.truncf %236 : vector<16x16xf32> to vector<16x16xbf16>
    %240 = arith.truncf %214 : vector<16x32xf32> to vector<16x32xbf16>
    %cst_84 = arith.constant dense<0.000000e+00> : vector<16x32xf32>
    %241 = tpu.matmul %239, %240, %cst_84 {dimension_numbers = #tpu.dot_dimension_numbers<[1], [0], [0], [1], [0, 0, 1, 1], [], []>} : vector<16x16xbf16>, vector<16x32xbf16>, vector<16x32xf32> -> vector<16x32xf32>
    %242 = arith.subf %238, %241 : vector<16x32xf32>
    %243 = tpu.iota {dimensions = array<i32: 0>} : vector<8x8xi32>
    %244 = tpu.iota {dimensions = array<i32: 1>} : vector<8x8xi32>
    %245 = arith.cmpi sgt, %243, %244 : vector<8x8xi32>
    %246 = vector.extract_strided_slice %232 {offsets = [0, 0], sizes = [8, 16], strides = [1, 1]} : vector<16x16xf32> to vector<8x16xf32>
    %247 = vector.extract_strided_slice %204 {offsets = [0, 0], sizes = [8, 1], strides = [1, 1]} : vector<16x1xf32> to vector<8x1xf32>
    %248 = vector.extract_strided_slice %206 {offsets = [0, 0], sizes = [8, 1], strides = [1, 1]} : vector<16x1xf32> to vector<8x1xf32>
    %249 = vector.extract_strided_slice %242 {offsets = [0, 0], sizes = [8, 32], strides = [1, 1]} : vector<16x32xf32> to vector<8x32xf32>
    %250 = vector.extract_strided_slice %213 {offsets = [0, 0], sizes = [1, 8], strides = [1, 1]} : vector<1x16xf32> to vector<1x8xf32>
    %251 = vector.broadcast %248 : vector<8x1xf32> to vector<8x8xf32>
    %252 = vector.broadcast %250 : vector<1x8xf32> to vector<8x8xf32>
    %253 = arith.subf %251, %252 : vector<8x8xf32>
    %cst_85 = arith.constant -1.000000e+30 : f32
    %254 = vector.broadcast %cst_85 : f32 to vector<8x8xf32>
    %255 = arith.select %245, %253, %254 : vector<8x8xi1>, vector<8x8xf32>
    %256 = math.exp %255 : vector<8x8xf32>
    %257 = arith.truncf %246 : vector<8x16xf32> to vector<8x16xbf16>
    %258 = arith.truncf %246 : vector<8x16xf32> to vector<8x16xbf16>
    %cst_86 = arith.constant dense<0.000000e+00> : vector<8x8xf32>
    %259 = tpu.matmul %257, %258, %cst_86 {dimension_numbers = #tpu.dot_dimension_numbers<[1], [1], [0], [0], [0, 0, 1, 0], [], []>} : vector<8x16xbf16>, vector<8x16xbf16>, vector<8x8xf32> -> vector<8x8xf32>
    %260 = vector.broadcast %247 : vector<8x1xf32> to vector<8x8xf32>
    %261 = arith.mulf %260, %259 : vector<8x8xf32>
    %262 = arith.mulf %261, %256 : vector<8x8xf32>
    %263 = tpu.iota {dimensions = array<i32: 0>} : vector<8x8xi32>
    %264 = tpu.iota {dimensions = array<i32: 1>} : vector<8x8xi32>
    %265 = arith.cmpi eq, %263, %264 : vector<8x8xi32>
    %266 = arith.extui %265 : vector<8x8xi1> to vector<8x8xi32>
    %267 = arith.sitofp %266 : vector<8x8xi32> to vector<8x8xf32>
    %268 = arith.subf %267, %262 : vector<8x8xf32>
    %cst_87 = arith.constant 0.000000e+00 : f32
    %269 = vector.broadcast %cst_87 : f32 to vector<8x8xf32>
    %270 = arith.subf %269, %262 : vector<8x8xf32>
    %271 = arith.truncf %270 : vector<8x8xf32> to vector<8x8xbf16>
    %272 = arith.truncf %270 : vector<8x8xf32> to vector<8x8xbf16>
    %cst_88 = arith.constant dense<0.000000e+00> : vector<8x8xf32>
    %273 = tpu.matmul %271, %272, %cst_88 {dimension_numbers = #tpu.dot_dimension_numbers<[1], [0], [0], [1], [0, 0, 1, 1], [], []>} : vector<8x8xbf16>, vector<8x8xbf16>, vector<8x8xf32> -> vector<8x8xf32>
    %274 = arith.truncf %273 : vector<8x8xf32> to vector<8x8xbf16>
    %275 = arith.truncf %268 : vector<8x8xf32> to vector<8x8xbf16>
    %cst_89 = arith.constant dense<0.000000e+00> : vector<8x8xf32>
    %276 = tpu.matmul %274, %275, %cst_89 {dimension_numbers = #tpu.dot_dimension_numbers<[1], [0], [0], [1], [0, 0, 1, 1], [], []>} : vector<8x8xbf16>, vector<8x8xbf16>, vector<8x8xf32> -> vector<8x8xf32>
    %277 = arith.addf %268, %276 : vector<8x8xf32>
    %278 = arith.truncf %273 : vector<8x8xf32> to vector<8x8xbf16>
    %279 = arith.truncf %273 : vector<8x8xf32> to vector<8x8xbf16>
    %cst_90 = arith.constant dense<0.000000e+00> : vector<8x8xf32>
    %280 = tpu.matmul %278, %279, %cst_90 {dimension_numbers = #tpu.dot_dimension_numbers<[1], [0], [0], [1], [0, 0, 1, 1], [], []>} : vector<8x8xbf16>, vector<8x8xbf16>, vector<8x8xf32> -> vector<8x8xf32>
    %281 = arith.truncf %280 : vector<8x8xf32> to vector<8x8xbf16>
    %282 = arith.truncf %277 : vector<8x8xf32> to vector<8x8xbf16>
    %cst_91 = arith.constant dense<0.000000e+00> : vector<8x8xf32>
    %283 = tpu.matmul %281, %282, %cst_91 {dimension_numbers = #tpu.dot_dimension_numbers<[1], [0], [0], [1], [0, 0, 1, 1], [], []>} : vector<8x8xbf16>, vector<8x8xbf16>, vector<8x8xf32> -> vector<8x8xf32>
    %284 = arith.addf %277, %283 : vector<8x8xf32>
    %285 = arith.truncf %284 : vector<8x8xf32> to vector<8x8xbf16>
    %286 = arith.truncf %249 : vector<8x32xf32> to vector<8x32xbf16>
    %cst_92 = arith.constant dense<0.000000e+00> : vector<8x32xf32>
    %287 = tpu.matmul %285, %286, %cst_92 {dimension_numbers = #tpu.dot_dimension_numbers<[1], [0], [0], [1], [0, 0, 1, 1], [], []>} : vector<8x8xbf16>, vector<8x32xbf16>, vector<8x32xf32> -> vector<8x32xf32>
    %288 = vector.extract_strided_slice %232 {offsets = [8, 0], sizes = [8, 16], strides = [1, 1]} : vector<16x16xf32> to vector<8x16xf32>
    %289 = vector.extract_strided_slice %204 {offsets = [8, 0], sizes = [8, 1], strides = [1, 1]} : vector<16x1xf32> to vector<8x1xf32>
    %290 = vector.extract_strided_slice %206 {offsets = [8, 0], sizes = [8, 1], strides = [1, 1]} : vector<16x1xf32> to vector<8x1xf32>
    %291 = vector.extract_strided_slice %242 {offsets = [8, 0], sizes = [8, 32], strides = [1, 1]} : vector<16x32xf32> to vector<8x32xf32>
    %292 = vector.extract_strided_slice %232 {offsets = [0, 0], sizes = [8, 16], strides = [1, 1]} : vector<16x16xf32> to vector<8x16xf32>
    %293 = arith.truncf %288 : vector<8x16xf32> to vector<8x16xbf16>
    %294 = arith.truncf %292 : vector<8x16xf32> to vector<8x16xbf16>
    %cst_93 = arith.constant dense<0.000000e+00> : vector<8x8xf32>
    %295 = tpu.matmul %293, %294, %cst_93 {dimension_numbers = #tpu.dot_dimension_numbers<[1], [1], [0], [0], [0, 0, 1, 0], [], []>} : vector<8x16xbf16>, vector<8x16xbf16>, vector<8x8xf32> -> vector<8x8xf32>
    %296 = vector.broadcast %289 : vector<8x1xf32> to vector<8x8xf32>
    %297 = arith.mulf %296, %295 : vector<8x8xf32>
    %298 = vector.extract_strided_slice %213 {offsets = [0, 0], sizes = [1, 8], strides = [1, 1]} : vector<1x16xf32> to vector<1x8xf32>
    %299 = vector.broadcast %290 : vector<8x1xf32> to vector<8x8xf32>
    %300 = vector.broadcast %298 : vector<1x8xf32> to vector<8x8xf32>
    %301 = arith.subf %299, %300 : vector<8x8xf32>
    %302 = math.exp %301 : vector<8x8xf32>
    %303 = arith.mulf %297, %302 : vector<8x8xf32>
    %304 = arith.truncf %303 : vector<8x8xf32> to vector<8x8xbf16>
    %305 = arith.truncf %287 : vector<8x32xf32> to vector<8x32xbf16>
    %cst_94 = arith.constant dense<0.000000e+00> : vector<8x32xf32>
    %306 = tpu.matmul %304, %305, %cst_94 {dimension_numbers = #tpu.dot_dimension_numbers<[1], [0], [0], [1], [0, 0, 1, 1], [], []>} : vector<8x8xbf16>, vector<8x32xbf16>, vector<8x32xf32> -> vector<8x32xf32>
    %307 = arith.subf %291, %306 : vector<8x32xf32>
    %308 = vector.extract_strided_slice %213 {offsets = [0, 8], sizes = [1, 8], strides = [1, 1]} : vector<1x16xf32> to vector<1x8xf32>
    %309 = vector.broadcast %290 : vector<8x1xf32> to vector<8x8xf32>
    %310 = vector.broadcast %308 : vector<1x8xf32> to vector<8x8xf32>
    %311 = arith.subf %309, %310 : vector<8x8xf32>
    %cst_95 = arith.constant -1.000000e+30 : f32
    %312 = vector.broadcast %cst_95 : f32 to vector<8x8xf32>
    %313 = arith.select %245, %311, %312 : vector<8x8xi1>, vector<8x8xf32>
    %314 = math.exp %313 : vector<8x8xf32>
    %315 = arith.truncf %288 : vector<8x16xf32> to vector<8x16xbf16>
    %316 = arith.truncf %288 : vector<8x16xf32> to vector<8x16xbf16>
    %cst_96 = arith.constant dense<0.000000e+00> : vector<8x8xf32>
    %317 = tpu.matmul %315, %316, %cst_96 {dimension_numbers = #tpu.dot_dimension_numbers<[1], [1], [0], [0], [0, 0, 1, 0], [], []>} : vector<8x16xbf16>, vector<8x16xbf16>, vector<8x8xf32> -> vector<8x8xf32>
    %318 = vector.broadcast %289 : vector<8x1xf32> to vector<8x8xf32>
    %319 = arith.mulf %318, %317 : vector<8x8xf32>
    %320 = arith.mulf %319, %314 : vector<8x8xf32>
    %321 = tpu.iota {dimensions = array<i32: 0>} : vector<8x8xi32>
    %322 = tpu.iota {dimensions = array<i32: 1>} : vector<8x8xi32>
    %323 = arith.cmpi eq, %321, %322 : vector<8x8xi32>
    %324 = arith.extui %323 : vector<8x8xi1> to vector<8x8xi32>
    %325 = arith.sitofp %324 : vector<8x8xi32> to vector<8x8xf32>
    %326 = arith.subf %325, %320 : vector<8x8xf32>
    %cst_97 = arith.constant 0.000000e+00 : f32
    %327 = vector.broadcast %cst_97 : f32 to vector<8x8xf32>
    %328 = arith.subf %327, %320 : vector<8x8xf32>
    %329 = arith.truncf %328 : vector<8x8xf32> to vector<8x8xbf16>
    %330 = arith.truncf %328 : vector<8x8xf32> to vector<8x8xbf16>
    %cst_98 = arith.constant dense<0.000000e+00> : vector<8x8xf32>
    %331 = tpu.matmul %329, %330, %cst_98 {dimension_numbers = #tpu.dot_dimension_numbers<[1], [0], [0], [1], [0, 0, 1, 1], [], []>} : vector<8x8xbf16>, vector<8x8xbf16>, vector<8x8xf32> -> vector<8x8xf32>
    %332 = arith.truncf %331 : vector<8x8xf32> to vector<8x8xbf16>
    %333 = arith.truncf %326 : vector<8x8xf32> to vector<8x8xbf16>
    %cst_99 = arith.constant dense<0.000000e+00> : vector<8x8xf32>
    %334 = tpu.matmul %332, %333, %cst_99 {dimension_numbers = #tpu.dot_dimension_numbers<[1], [0], [0], [1], [0, 0, 1, 1], [], []>} : vector<8x8xbf16>, vector<8x8xbf16>, vector<8x8xf32> -> vector<8x8xf32>
    %335 = arith.addf %326, %334 : vector<8x8xf32>
    %336 = arith.truncf %331 : vector<8x8xf32> to vector<8x8xbf16>
    %337 = arith.truncf %331 : vector<8x8xf32> to vector<8x8xbf16>
    %cst_100 = arith.constant dense<0.000000e+00> : vector<8x8xf32>
    %338 = tpu.matmul %336, %337, %cst_100 {dimension_numbers = #tpu.dot_dimension_numbers<[1], [0], [0], [1], [0, 0, 1, 1], [], []>} : vector<8x8xbf16>, vector<8x8xbf16>, vector<8x8xf32> -> vector<8x8xf32>
    %339 = arith.truncf %338 : vector<8x8xf32> to vector<8x8xbf16>
    %340 = arith.truncf %335 : vector<8x8xf32> to vector<8x8xbf16>
    %cst_101 = arith.constant dense<0.000000e+00> : vector<8x8xf32>
    %341 = tpu.matmul %339, %340, %cst_101 {dimension_numbers = #tpu.dot_dimension_numbers<[1], [0], [0], [1], [0, 0, 1, 1], [], []>} : vector<8x8xbf16>, vector<8x8xbf16>, vector<8x8xf32> -> vector<8x8xf32>
    %342 = arith.addf %335, %341 : vector<8x8xf32>
    %343 = arith.truncf %342 : vector<8x8xf32> to vector<8x8xbf16>
    %344 = arith.truncf %307 : vector<8x32xf32> to vector<8x32xbf16>
    %cst_102 = arith.constant dense<0.000000e+00> : vector<8x32xf32>
    %345 = tpu.matmul %343, %344, %cst_102 {dimension_numbers = #tpu.dot_dimension_numbers<[1], [0], [0], [1], [0, 0, 1, 1], [], []>} : vector<8x8xbf16>, vector<8x32xbf16>, vector<8x32xf32> -> vector<8x32xf32>
    %346 = tpu.concatenate %287, %345 in 0 : vector<8x32xf32>, vector<8x32xf32> -> vector<16x32xf32>
    %347 = tpu.iota {dimensions = array<i32: 0>} : vector<8x16xi32>
    %348 = tpu.iota {dimensions = array<i32: 1>} : vector<8x16xi32>
    %c1_i32_103 = arith.constant 1 : i32
    %349 = vector.broadcast %c1_i32_103 : i32 to vector<8x16xi32>
    %350 = arith.addi %347, %349 : vector<8x16xi32>
    %c2_i32_104 = arith.constant 2 : i32
    %351 = vector.broadcast %c2_i32_104 : i32 to vector<8x16xi32>
    %352 = arith.muli %350, %351 : vector<8x16xi32>
    %353 = arith.cmpi slt, %348, %352 : vector<8x16xi32>
    %354 = arith.truncf %224 : vector<8x16xf32> to vector<8x16xbf16>
    %355 = arith.truncf %232 : vector<16x16xf32> to vector<16x16xbf16>
    %cst_105 = arith.constant dense<0.000000e+00> : vector<8x16xf32>
    %356 = tpu.matmul %354, %355, %cst_105 {dimension_numbers = #tpu.dot_dimension_numbers<[1], [1], [0], [0], [0, 0, 1, 0], [], []>} : vector<8x16xbf16>, vector<16x16xbf16>, vector<8x16xf32> -> vector<8x16xf32>
    %357 = vector.broadcast %208 : vector<8x1xf32> to vector<8x16xf32>
    %358 = vector.broadcast %213 : vector<1x16xf32> to vector<8x16xf32>
    %359 = arith.subf %357, %358 : vector<8x16xf32>
    %cst_106 = arith.constant -1.000000e+30 : f32
    %360 = vector.broadcast %cst_106 : f32 to vector<8x16xf32>
    %361 = arith.select %353, %359, %360 : vector<8x16xi1>, vector<8x16xf32>
    %362 = math.exp %361 : vector<8x16xf32>
    %363 = arith.mulf %356, %362 : vector<8x16xf32>
    %364 = math.exp %208 : vector<8x1xf32>
    %365 = vector.broadcast %364 : vector<8x1xf32> to vector<8x16xf32>
    %366 = arith.mulf %224, %365 : vector<8x16xf32>
    %367 = arith.truncf %366 : vector<8x16xf32> to vector<8x16xbf16>
    %368 = arith.truncf %214 : vector<16x32xf32> to vector<16x32xbf16>
    %cst_107 = arith.constant dense<0.000000e+00> : vector<8x32xf32>
    %369 = tpu.matmul %367, %368, %cst_107 {dimension_numbers = #tpu.dot_dimension_numbers<[1], [0], [0], [1], [0, 0, 1, 1], [], []>} : vector<8x16xbf16>, vector<16x32xbf16>, vector<8x32xf32> -> vector<8x32xf32>
    %370 = arith.truncf %363 : vector<8x16xf32> to vector<8x16xbf16>
    %371 = arith.truncf %346 : vector<16x32xf32> to vector<16x32xbf16>
    %cst_108 = arith.constant dense<0.000000e+00> : vector<8x32xf32>
    %372 = tpu.matmul %370, %371, %cst_108 {dimension_numbers = #tpu.dot_dimension_numbers<[1], [0], [0], [1], [0, 0, 1, 1], [], []>} : vector<8x16xbf16>, vector<16x32xbf16>, vector<8x32xf32> -> vector<8x32xf32>
    %373 = arith.addf %369, %372 : vector<8x32xf32>
    %374 = vector.extract_strided_slice %208 {offsets = [7, 0], sizes = [1, 1], strides = [1, 1]} : vector<8x1xf32> to vector<1x1xf32>
    %375 = vector.broadcast %374 : vector<1x1xf32> to vector<16x1xf32>
    %376 = arith.subf %375, %206 : vector<16x1xf32>
    %377 = math.exp %376 : vector<16x1xf32>
    %378 = vector.broadcast %377 : vector<16x1xf32> to vector<16x16xf32>
    %379 = arith.mulf %232, %378 : vector<16x16xf32>
    %380 = math.exp %374 : vector<1x1xf32>
    %381 = vector.broadcast %380 : vector<1x1xf32> to vector<16x32xf32>
    %382 = arith.mulf %381, %214 : vector<16x32xf32>
    %383 = arith.truncf %379 : vector<16x16xf32> to vector<16x16xbf16>
    %384 = arith.truncf %346 : vector<16x32xf32> to vector<16x32xbf16>
    %cst_109 = arith.constant dense<0.000000e+00> : vector<16x32xf32>
    %385 = tpu.matmul %383, %384, %cst_109 {dimension_numbers = #tpu.dot_dimension_numbers<[0], [0], [1], [1], [0, 1, 1, 1], [], []>} : vector<16x16xbf16>, vector<16x32xbf16>, vector<16x32xf32> -> vector<16x32xf32>
    %386 = arith.addf %382, %385 : vector<16x32xf32>
    %c0_110 = arith.constant 0 : index
    %c0_111 = arith.constant 0 : index
    %387 = vector.load %arg10[%c0_110, %c0_111] : memref<16x32xf32, #tpu.memory_space<vmem>>, vector<16x32xf32>
    tpu.vector_store %arg10[%c0_110, %c0_111], %386 {strides = array<i32>} : memref<16x32xf32, #tpu.memory_space<vmem>>, vector<16x32xf32>,
    %c0_112 = arith.constant 0 : index
    %c8_113 = arith.constant 8 : index
    %c0_114 = arith.constant 0 : index
    %388 = vector.load %arg9[%c0_112, %c8_113, %c0_114] : memref<1x16x32xf32, #tpu.memory_space<vmem>>, vector<1x8x32xf32>
    %389 = vector.shape_cast %388 : vector<1x8x32xf32> to vector<8x32xf32>
    %390 = vector.shape_cast %373 : vector<8x32xf32> to vector<1x8x32xf32>
    tpu.vector_store %arg9[%c0_112, %c8_113, %c0_114], %390 {strides = array<i32>} : memref<1x16x32xf32, #tpu.memory_space<vmem>>, vector<1x8x32xf32>,
    return
  }
  func.func @transform_0(%arg0: i32, %arg1: i32) -> (i32, i32, i32) {
    %c0_i32 = arith.constant 0 : i32
    %c0_i32_0 = arith.constant 0 : i32
    return %arg0, %arg1, %c0_i32 : i32, i32, i32
  }
  func.func @transform_1(%arg0: i32, %arg1: i32) -> (i32, i32, i32) {
    %c0_i32 = arith.constant 0 : i32
    %c0_i32_0 = arith.constant 0 : i32
    return %arg0, %arg1, %c0_i32 : i32, i32, i32
  }
  func.func @transform_2(%arg0: i32, %arg1: i32) -> (i32, i32, i32) {
    %c0_i32 = arith.constant 0 : i32
    %c0_i32_0 = arith.constant 0 : i32
    return %arg0, %arg1, %c0_i32 : i32, i32, i32
  }
  func.func @transform_3(%arg0: i32, %arg1: i32) -> (i32, i32, i32) {
    %c0_i32 = arith.constant 0 : i32
    %c0_i32_0 = arith.constant 0 : i32
    return %arg0, %arg1, %c0_i32 : i32, i32, i32
  }
  func.func @transform_4(%arg0: i32, %arg1: i32) -> (i32, i32, i32) {
    %c0_i32 = arith.constant 0 : i32
    %c0_i32_0 = arith.constant 0 : i32
    return %arg0, %arg1, %c0_i32 : i32, i32, i32
  }
  func.func @transform_5(%arg0: i32, %arg1: i32) -> (i32, i32, i32) {
    %c0_i32 = arith.constant 0 : i32
    %c0_i32_0 = arith.constant 0 : i32
    %c0_i32_1 = arith.constant 0 : i32
    return %arg0, %c0_i32, %c0_i32_0 : i32, i32, i32
  }
  func.func @transform_6(%arg0: i32, %arg1: i32) -> (i32, i32, i32) {
    %c0_i32 = arith.constant 0 : i32
    %c0_i32_0 = arith.constant 0 : i32
    return %arg0, %arg1, %c0_i32 : i32, i32, i32
  }
  func.func @transform_7(%arg0: i32, %arg1: i32) -> (i32, i32, i32) {
    %c0_i32 = arith.constant 0 : i32
    %c0_i32_0 = arith.constant 0 : i32
    return %arg0, %arg1, %c0_i32 : i32, i32, i32
  }
}

</mosaic_0001>

<bundles_post_ra>
// kernel: tpu_custom_call.1
= control target key start
LH: loop header
LB: loop body
LE: loop exit
PB: predicated region body
PF: predicated region fallthrough
CT: control target
= control target key end

     0   :  { %s2712_s0 = inlined_call_operand.vmem [shape: f32[4,32,16], index: 0, kind: input, shape index: {}]   ;;  %s2713_s1 = inlined_call_operand.vmem [shape: f32[4,64,16], index: 1, kind: input, shape index: {}]   ;;  %s2714_s2 = inlined_call_operand.vmem [shape: f32[4,64,32], index: 2, kind: input, shape index: {}]   ;;  %s2715_s3 = inlined_call_operand.vmem [shape: f32[4,64,1], index: 3, kind: input, shape index: {}]   ;;  %s2716_s4 = inlined_call_operand.vmem [shape: f32[4,64,1], index: 4, kind: input, shape index: {}]   ;;  %s2717_s5 = inlined_call_operand.vmem [shape: f32[4,4,16], index: 5, kind: input, shape index: {}]   ;;  %s2718_s6 = inlined_call_operand.vmem [shape: f32[4,32,1], index: 6, kind: input, shape index: {}]   ;;  %s2719_s7 = inlined_call_operand.hbm [shape: f32[4,32,32], index: 7, kind: output, shape index: {}]  }
   0x1   :  { %2732 = sst [smem:[#allocation16_spill]] %s2712_s0 }
   0x2   :  { %12 = vsyncpa [#allocation4], 0 }
   0x3   :  { %14 = vsyncpa [#allocation4 + $0x1], 0  ;;  %s2195_s24 = smov 0   ;;  %s2197_s25 = smov 0  }
   0x4   :  { %s2199_s26 = smov 0   ;;  %s2201_s27 = smov 0  }
   0x5   :  { %s2203_s28 = smov 0   ;;  %s2205_s29 = smov 0  }
   0x6   :  { %s2207_s30 = smov 0   ;;  %s2209_s8 = smov 0  }
   0x7 LB: > { %2733 = sst [smem:[#allocation6_spill]] %s2119_s24  ;;  %s1845_s9 = sadd.s32 4294967295, %s2147_s8   ;;  %s2147_s8 = sphi %s2209_s8, %s20_s8   ;;  %s2143_s30 = sphi %s2207_s30, %s2758_s30   ;;  %s2139_s29 = sphi %s2205_s29, %s2757_s29   ;;  %s2135_s28 = sphi %s2203_s28, %s2756_s28   ;;  %s2131_s27 = sphi %s2201_s27, %s2755_s27   ;;  %s2127_s26 = sphi %s2199_s26, %s2754_s26   ;;  %s2123_s25 = sphi %s2197_s25, %s2760_s25   ;;  %s2119_s24 = sphi %s2195_s24, %s2759_s24  }
   0x8   : > { %2734 = sst [smem:[#allocation7_spill]] %s2127_s26  ;;  %s1846_s10 = sadd.s32 4294967294, %s2147_s8  }
   0x9   : > { %2735 = sst [smem:[#allocation8_spill]] %s2139_s29  ;;  %s29_s11 = sadd.s32 1, %s2139_s29 }
   0xa   : > { %2736 = sst [smem:[#allocation9_spill]] %s2143_s30  ;;  %p30_p0 = scmp.ge.s32.totalorder %s29_s11, 2 }
   0xb   : > { %2737 = sst [smem:[#allocation10_spill]] %s2147_s8  ;;  %s32_s12 = sadd.s32 1, %s2143_s30 }
   0xc   : > { %p245_p1 = scmp.ne.s32.totalorder %s2127_s26, %s2123_s25  ;;  %p246_p2 = scmp.eq.s32.totalorder %s1845_s9, 7 }
   0xd   : > { %s2762_s11 = smov (%p30_p0, %s29_s11), 0  ;;  %s2764_s12 = smov (!%p30_p0, %s32_s12), %s2143_s30 }
   0xe   : > { %2738 = sst [smem:[#allocation11_spill]] %s2762_s11  ;;  %s231_s13 = ssub.s32 %s2139_s29, %s2762_s11 }
   0xf   : > { %p2246_p3 = por %p246_p2, %p245_p1  ;;  %p34_p4 = scmp.ge.s32.totalorder %s2764_s12, 4 }
  0x10   : > { %p251_p5 = scmp.ne.s32.totalorder %s2123_s25, %s2119_s24  ;;  %p252_p6 = scmp.eq.s32.totalorder %s1846_s10, 7 }
  0x11   : > { %s2739_s14 = scalar_select %p2246_p3, 1, 0 }
  0x12   : > { %p1849_p7 = scmp.ge.s32.totalorder %s2147_s8, 1  ;;  %s2766_s12 = smov (%p34_p4, %s2764_s12), 0 }
  0x13   : > { %2740 = sst [smem:[#allocation12_spill]] %s2739_s14  ;;  %p2255_p8 = por %p252_p6, %p251_p5 }
  0x14   : > { %2741 = sst [smem:[#allocation13_spill]] %s2766_s12  ;;  %p355_p9 = scmp.lt.s32.totalorder %s2147_s8, 9 }
  0x15   : > { %s2742_s15 = scalar_select %p2255_p8, 1, 0 }
  0x16   : > { %s230_s16 = ssub.s32 %s2143_s30, %s2766_s12  ;;  %s235_s17 = sadd.s32 1, %s2127_s26 }
  0x17   : > { %2743 = sst [smem:[#allocation14_spill]] %s2742_s15  ;;  %s232_s18 = sor.u32 %s231_s13, %s230_s16 }
  0x18   : > { %p356_p10 = pnand %p1849_p7, %p355_p9  ;;  %p233_p11 = scmp.eq.s32.totalorder %s232_s18, 0 }
  0x19   : > { %s2725_s20 = sand.u32 (!%p356_p10), 1, %s2123_s25   ;;  %s2268_s21 = sshll.u32 (!%p356_p10), %s2131_s27, 1 }
  0x1a   : > { %s2264_s19 = scalar_select %p233_p11, %s2127_s26, %s235_s17  }
  0x1b   : > { %359 = sbr.rel (%p356_p10) target bundleno = 2578 (0xa12), region = 48  ;;  %s1850_s22 = sshll.u32 (!%p356_p10), %s2725_s20, 4 }
  0x1c   : > { %2744 = sst [smem:[#allocation15_spill]] %s2264_s19  ;;  %p441_p12 = scmp.lt.s32.totalorder (!%p356_p10), %s2135_s28, 3 }
  0x1d   : > { %p443_p13 = scmp.lt.s32.totalorder (!%p356_p10), %s2268_s21, 3  ;;  %s1854_s13 = sshll.u32 (!%p356_p10), %s2131_s27, 2 }
  0x1e   : > { %p453_p0 = scmp.lt.s32.totalorder (!%p356_p10), %s1854_s13, 7  ;;  %s2745_s0 = sld [smem:[#allocation16_spill]] (!%p356_p10) }
  0x1f   : > { %p1870_p1 = scmp.ne.s32.totalorder (!%p356_p10), %s2131_s27, 0 }
  0x20   : > { %s442_s23 = scalar_select %p441_p12, %s2135_s28, 3 }
  0x21   : > { %s444_s9 = scalar_select %p443_p13, %s2268_s21, 3 }
  0x22   : > { %s1852_s10 = sshll.u32 %s442_s23, 2  ;;  %s1855_s18 = sshll.u32 %s442_s23, 3 }
  0x23   : > { %s446_s16 = sadd.s32 %s1852_s10, %s444_s9  ;;  %s493_s26 = scalar_lea.vmem %s2717_s5, %s1852_s10 }
  0x24   : > { %s1853_s17 = sshll.u32 %s446_s16, 3  ;;  %s2768_s13 = smov (!%p453_p0, %s1854_s13), 7 }
  0x25   : > { %s2280_s30 = scalar_lea.vmem %s2745_s0, %s1853_s17  ;;  %s2288_s24 = scalar_lea.vmem %s2718_s6, %s1853_s17 }
  0x26   : > { %s456_s8 = sadd.s32 %s1855_s18, %s2768_s13  ;;  %509 = sbr.rel (%p1870_p1) target bundleno = 46 (0x2e), region = 52 }
  0x27   : > { %s1856_s9 = sshll.u32 %s456_s8, 3  ;;  %s2310_s8 = scalar_lea.vmem [#allocation3], %s1850_s22 }
  0x28   : > { %s2293_s23 = scalar_lea.vmem %s2713_s1, %s1856_s9  ;;  %s2298_s0 = scalar_lea.vmem %s2714_s2, %s1856_s9 }
  0x29   : > { %s2303_s10 = scalar_lea.vmem %s2715_s3, %s1856_s9  ;;  %s2308_s13 = scalar_lea.vmem %s2716_s4, %s1856_s9 }
  0x2b   : > { %vm510_vm0 = vcmask 261120   ;;  %v2149_v0 = vmov 0.0  }
  0x2c   : > { %511 = vst.msk [vmem:[#allocation2] sm:$0xff] %vm510_vm0, %v2149_v0 }
  0x2d   : > { %512 = vst.msk [vmem:[#allocation2 + $0x8] sm:$0xff] %vm510_vm0, %v2149_v0 }
  0x2e PF: > { %v518_v1 = vld [vmem:[%s2303_s10] sm:$0xff]  ;;  %vm529_vm1 = vcmask 130048   ;;  %v2150_v4 = vmov 0   ;;  %v521_v7 = vld [vmem:[%s2308_s13 + $0x8] sm:$0xff]  ;;  %s2322_s27 = scalar_lea.vmem %s493_s26, %s2268_s21  ;;  %v2336_v21 = vld [vmem:[%s2293_s23 + $0x10] sm:$0xff]  ;;  %vm673_vm10 = vcmask 1043456  }
  0x2f   : > { %v2315_v2 = vld [vmem:[%s2293_s23] sm:$0xff]  ;;  %2001 = vset.pattern.permute.xlu1 %v2150_v4  ;;  %2002 = vset.pattern.permute.xlu2 %v2150_v4  ;;  %v580_v9 = vmul.f32 1.442695, %v521_v7  ;;  %v519_v13 = vld [vmem:[%s2303_s10 + $0x8] sm:$0xff]  ;;  %v1115_v22 = vmul.f32 %v2336_v21, %v2336_v21  ;;  %v1091_v28 = vld [vmem:[%s2308_s13 + $0x18] sm:$0xff]  ;;  %vm669_vm11 = vcmask 64512  }
  0x30   : > { %v520_v3 = vld [vmem:[%s2308_s13] sm:$0xff]  ;;  %v546_v5 = vmul.f32 %v2315_v2, %v2315_v2  ;;  %598 = vperm.xlu1 %2001, %v518_v1   ;;  %2000 = vset.pattern.permute.xlu0 %v2150_v4  ;;  %v2328_v17 = vld [vmem:[%s2293_s23 + $0x8] sm:$0xff]  ;;  %v2351_v32 = vld [vmem:[%s2308_s13 + $0x10] sm:$0xff]  ;;  %v1149_v35 = vmul.f32 1.442695, %v1091_v28  ;;  %s1653_s16 = sshll.u32 %s2310_s8, 4  ;;  %s1654_s16 = int_to_ptr.vmem [resolvable:$true] %s1653_s16 }
  0x31   : > { %v578_v6 = vmul.f32 1.442695, %v520_v3  ;;  %v522_v15 = vld [vmem:[%s2288_s24] sm:$0xff]  ;;  %v547_v19 = vmul.f32 %v2328_v17, %v2328_v17  ;;  %v1117_v24 = vsel %vm529_vm1, %v1115_v22, 0.0  ;;  %v2342_v26 = vld [vmem:[%s2288_s24 + $0x8] sm:$0xff]  ;;  %v1088_v37 = vld [vmem:[%s2303_s10 + $0x10] sm:$0xff] }
  0x32   : > { %v548_v8 = vsel %vm529_vm1, %v546_v5, 0.0  ;;  %v1018_v16 = vperm.slane %v522_v15, 7  ;;  %v1574_v27 = vperm.slane %v2342_v26, 7  ;;  %v975_v30 = vmul.f32 1.442695, %v522_v15  ;;  %v2360_v40 = vld [vmem:[%s2303_s10 + $0x18] sm:$0xff] }
  0x33   : > { %2005 = vpow2.f32 %v578_v6  ;;  %549 = vadd.xlane.f32.xlu0 %v548_v8  ;;  %v551_v20 = vsel %vm529_vm1, %v547_v19, 0.0  ;;  %v1147_v33 = vmul.f32 1.442695, %v2351_v32  ;;  %v2364_v44 = vld [vmem:[%s2322_s27] ss:$0 sm:$0xff]  ;;  %s2151_s24 = smov 120  }
  0x34   : > { %2007 = vpow2.f32 %v580_v9  ;;  %v2330_v18 = vsub.f32 %v1018_v16, %v521_v7  ;;  %v1019_v23 = vsub.f32 %v1018_v16, %v520_v3  ;;  %v2348_v29 = vsub.f32 %v1574_v27, %v1091_v28  ;;  %v2377_v59 = vld [vmem:[#allocation2] sm:$0xff]  ;;  %v2379_v60 = vld [vmem:[#allocation2 + $0x8] sm:$0xff]  ;;  %s2749_s12 = sand.u32 1, %s2123_s25   ;;  %s2073_s15 = scalar_lea.hbm %s2719_s7, 128 }
  0x35   : > { %v2385_v62 = vpack.c.bf16 %v2379_v60, %v2377_v59  ;;  %s1639_s29 = scalar_lea.sflag [#allocation4], %s2749_s12 }
  0x36   : > { %v1021_v25 = vmul.f32 1.442695, %v1019_v23 }
  0x37   : > { %620 = vmatpush.bf16.msra.mxu0 %v2385_v62 }
  0x38   : > { %2009 = vpow2.f32 %v1021_v25 }
  0x39   : > { %v2006_v10 = vpop.eup %2005  ;;  %2011 = vpow2.f32 %v975_v30  ;;  %v1575_v30 = vsub.f32 %v1574_v27, %v2351_v32  ;;  %v1531_v27 = vmul.f32 1.442695, %v2342_v26 }
  0x3a   : > { %v582_v11 = vmul.f32 %v2006_v10, %v518_v1  ;;  %v2008_v12 = vpop.eup %2007  ;;  %2013 = vpow2.f32 %v1147_v33  ;;  %v2390_v1 = vld [vmem:[%s2280_s30] sm:$0xff] }
  0x3b   : > { %v583_v14 = vmul.f32 %v2008_v12, %v519_v13  ;;  %2015 = vpow2.f32 %v1149_v35  ;;  %v1577_v33 = vmul.f32 1.442695, %v1575_v30 }
  0x3c   : > { %586 = vperm.xlu2 %2002, %v582_v11  }
  0x3e   : > { %v2010_v31 = vpop.eup %2009 }
  0x3f   : > { %v2354_v34 = vpop.eup %2011 }
  0x40   : > { %v2014_v36 = vpop.eup %2013 }
  0x41   : > { %v1151_v38 = vmul.f32 %v2014_v36, %v1088_v37  ;;  %v2016_v39 = vpop.eup %2015  ;;  %v2428_v36 = vld [vmem:[%s2280_s30 + $0x8] sm:$0xff] }
  0x42   : > { %v1152_v41 = vmul.f32 %v2016_v39, %v2360_v40 }
  0x44   : > { %591 = vperm.xlu2 %2002, %v583_v14  }
  0x47   : > { %636 = vperm.xlu0 %2000, %v520_v3  }
  0x4c   : > { %789 = vperm.xlu2 %2002, %v521_v7  }
  0x5a   : > { %552 = vadd.xlane.f32.xlu1 %v551_v20 }
  0x71   : > { %1118 = vadd.xlane.f32.xlu0 %v1117_v24 }
  0x73   : > { %967 = vperm.xlu1 %2001, %v522_v15  }
  0x7b   : > { %1027 = vperm.xlu1 %2001, %v2010_v31  }
  0x83   : > { %1200 = vperm.xlu1 %2001, %v2351_v32  }
  0x85   : > { %979 = vperm.xlu0 %2000, %v2354_v34  }
  0x8b   : > { %1167 = vperm.xlu1 %2001, %v1088_v37   ;;  %v1098_v37 = vmul.f32 %v2428_v36, %v2428_v36 }
  0x8d   : > { %1155 = vperm.xlu0 %2000, %v1151_v38   ;;  %v1099_v38 = vsel %vm529_vm1, %v1098_v37, 0.0 }
  0x95   : > { %1160 = vperm.xlu0 %2000, %v1152_v41  }
  0x96   : > { %v587_v42 = vpop.permute.xlu2 %586 }
  0x9d   : > { %1348 = vperm.xlu0 %2000, %v1091_v28   ;;  %v2417_v28 = vld [vmem:[%s2293_s23 + $0x18] sm:$0xff] }
  0x9e   : > { %v592_v43 = vpop.permute.xlu2 %591  ;;  %v1116_v31 = vmul.f32 %v2417_v28, %v2417_v28 }
  0xa0   : > { %v1120_v35 = vsel %vm529_vm1, %v1116_v31, 0.0 }
  0xa2   : > { %v2381_v61 = vpop.permute.xlu1 %598 }
  0xa6   : > { %v790_v45 = vpop.permute.xlu2 %789  ;;  %v550_v47 = vpop.xlane.xlu0 %549 }
  0xa7   : > { %v2367_v46 = vsub.f32 %v790_v45, %v2364_v44  ;;  %v554_v48 = vadd.f32 1e-06, %v550_v47 }
  0xa9   : > { %819 = vrot.lane.b32.xlu2 %v2367_v46, %s2151_s24  ;;  %2017 = vrsqrt.f32 %v554_v48  ;;  %vm562_vm3 = vweird.f32 %v554_v48  ;;  %v793_v30 = vmul.f32 1.442695, %v2367_v46 }
  0xaf   : > { %v2018_v49 = vpop.eup %2017 }
  0xb0   : > { %v557_v50 = vmul.f32 %v2018_v49, %v554_v48  ;;  %vm563_vm2 = vweird.f32 %v2018_v49 }
  0xb1   : > { %603 = vperm.xlu2 %2002, %v519_v13   ;;  %vm564_vm4 = vmor %vm562_vm3, %vm563_vm2  ;;  %v1023_v13 = vmul.f32 1.442695, %v2330_v18  ;;  %v2411_v18 = vld [vmem:[%s2322_s27 + $0x1] ss:$0 sm:$0xff] }
  0xb2   : > { %v558_v51 = vmul.f32 %v2018_v49, %v557_v50 }
  0xb4   : > { %v559_v52 = vmul.f32 0.5, %v558_v51 }
  0xb6   : > { %v560_v53 = vsub.f32 1.5, %v559_v52 }
  0xb8   : > { %v561_v54 = vmul.f32 %v2018_v49, %v560_v53 }
  0xb9   : > { %v637_v12 = vpop.permute.xlu0 %636 }
  0xba   : > { %v565_v55 = vsel %vm564_vm4, %v2018_v49, %v561_v54  ;;  %v640_v45 = vsub.f32 %v637_v12, %v2364_v44  ;;  %v2152_v54 = vmov 0.0  }
  0xbb   : > { %v2372_v56 = vmul.f32 %v565_v55, %v2315_v2  ;;  %v528_v2 = vmul.f32 %v2390_v1, %v2390_v1 }
  0xbd   : > { %v644_v57 = vpack.c.bf16 %v2372_v56, %v2372_v56  ;;  %v530_v3 = vsel %vm529_vm1, %v528_v2, 0.0  ;;  %v594_v14 = vmul.f32 %v587_v42, %v2372_v56 }
  0xbf   : > { %v646_v58 = vsel %vm529_vm1, %v644_v57, 0 }
  0xc0   : > { %655 = vmatpush.bf16.xpose.msra.mxu1 %v646_v58 }
  0xc7   : > { %1873 = vmatmul.msk.bf16.vlgmr.msra.gmra.mxu1 %vm529_vm1, %v644_v57 }
  0xc8   : > { %780 = vmatpush.bf16.xpose.msrb.mxu1 %v646_v58 }
  0xcd   : > { %v553_v63 = vpop.xlane.xlu1 %552 }
  0xce   : > { %v555_v0 = vadd.f32 1e-06, %v553_v63 }
  0xd0   : > { %2019 = vrsqrt.f32 %v555_v0  ;;  %vm572_vm5 = vweird.f32 %v555_v0 }
  0xd1   : > { %2021 = vpow2.f32 %v1023_v13  ;;  %v516_v13 = vld [vmem:[%s2298_s0] sm:$0xff] }
  0xd2   : > { %2023 = vpow2.f32 %v1577_v33  ;;  %v1579_v33 = vmul.f32 1.442695, %v2348_v29 }
  0xd3   : > { %2025 = vpow2.f32 %v1531_v27 }
  0xd6   : > { %v2020_v4 = vpop.eup %2019 }
  0xd7   : > { %v567_v5 = vmul.f32 %v2020_v4, %v555_v0  ;;  %vm573_vm6 = vweird.f32 %v2020_v4  ;;  %v2022_v20 = vpop.eup %2021 }
  0xd8   : > { %vm574_vm7 = vmor %vm572_vm5, %vm573_vm6  ;;  %v2024_v32 = vpop.eup %2023 }
  0xd9   : > { %v568_v6 = vmul.f32 %v2020_v4, %v567_v5  ;;  %v2435_v39 = vpop.eup %2025 }
  0xda   : > { %531 = vadd.xlane.f32.xlu2 %v530_v3 }
  0xdb   : > { %v569_v7 = vmul.f32 0.5, %v568_v6 }
  0xdd   : > { %v570_v8 = vsub.f32 1.5, %v569_v7 }
  0xdf   : > { %v571_v9 = vmul.f32 %v2020_v4, %v570_v8 }
  0xe1   : > { %v575_v10 = vsel %vm574_vm7, %v2020_v4, %v571_v9  ;;  %vm1079_vm7 = vcmask 261120  }
  0xe2   : > { %v2396_v11 = vmul.f32 %v575_v10, %v2328_v17 }
  0xe4   : > { %v595_v15 = vmul.f32 %v592_v43, %v2396_v11  ;;  %v2402_v19 = vpop.xlane.xlu0 %1118  ;;  %v2439_v41 = vpack.c.bf16 %v2396_v11, %v2396_v11 }
  0xe5   : > { %v2464_v58 = vpop.permute.xlu1 %967 }
  0xe6   : > { %v608_v16 = vpack.c.bf16 %v595_v15, %v594_v14  ;;  %1880 = vmatmul.msk.bf16.vlgmr.msrb.gmra.mxu1 %vm529_vm1, %v2439_v41  ;;  %v606_v14 = vmul.f32 %v2381_v61, %v516_v13 }
  0xe8   : > { %1872 = vmatmul.msk.bf16.vlgmr.msra.gmra.mxu0 %vm529_vm1, %v608_v16 }
  0xed   : > { %v1028_v7 = vpop.permute.xlu1 %1027 }
  0xee   : > { %v1035_v9 = vmul.f32 %v1028_v7, %v2372_v56 }
  0xf2   : > { %1032 = vperm.xlu2 %2002, %v2022_v20  }
  0xf7   : > { %v2404_v22 = vpop.permute.xlu0 %979 }
  0xff   : > { %v2406_v17 = vpop.permute.xlu0 %1155 }
 0x103   : > { %v2454_v48 = vpop.permute.xlu2 %819 }
 0x107   : > { %v2408_v23 = vpop.permute.xlu0 %1160 }
 0x10b   : > { %v2457_v50 = vpop.permute.xlu2 %603 }
 0x10f   : > { %v1349_v24 = vpop.permute.xlu0 %1348 }
 0x110   : > { %v2414_v25 = vsub.f32 %v1349_v24, %v2411_v18 }
 0x112   : > { %1378 = vrot.lane.b32.xlu0 %v2414_v25, %s2151_s24 }
 0x11a   : > { %1172 = vperm.xlu0 %2000, %v2360_v40   ;;  %v629_v40 = vlaneseq }
 0x11b   : > { %1121 = vadd.xlane.f32.xlu2 %v1120_v35 }
 0x11c   : > { %v2444_v42 = vshrl.u32 %v629_v40, 7  ;;  %v2446_v43 = vand.u32 127, %v629_v40 }
 0x11e   : > { %vm633_vm8 = vcmp.gt.s32.totalorder %v2444_v42, %v2446_v43  ;;  %vm663_vm9 = vcmp.eq.s32.totalorder %v2444_v42, %v2446_v43 }
 0x11f   : > { %v641_v47 = vsel %vm633_vm8, %v640_v45, -1e+30  ;;  %v2462_v55 = vsel %vm663_vm9, 1.0, %v2152_v54 }
 0x120   : > { %v642_v49 = vmul.f32 1.442695, %v641_v47  ;;  %v1123_v47 = vadd.f32 1e-06, %v2402_v19 }
 0x122   : > { %1583 = vperm.xlu0 %2000, %v2024_v32   ;;  %2027 = vpow2.f32 %v642_v49  ;;  %vm1131_vm12 = vweird.f32 %v1123_v47 }
 0x123   : > { %1100 = vadd.xlane.f32.xlu2 %v1099_v38  ;;  %2029 = vpow2.f32 %v793_v30 }
 0x124   : > { %2031 = vpow2.f32 %v1579_v33 }
 0x125   : > { %2033 = vrsqrt.f32 %v1123_v47 }
 0x128   : > { %v2028_v51 = vpop.eup %2027 }
 0x129   : > { %v2030_v31 = vpop.eup %2029 }
 0x12a   : > { %1535 = vperm.xlu0 %2000, %v2435_v39  }
 0x13b   : > { %1523 = vperm.xlu2 %2002, %v2342_v26  }
 0x144   : > { %v657_v52 = vpop.f32.mrf.mxu1 }
 0x145   : > { %v661_v53 = vmul.f32 %v657_v52, %v2381_v61  ;;  %v2032_v61 = vpop.eup %2031  ;;  %v2490_v52 = vpop.permute.xlu1 %1200 }
 0x147   : > { %v662_v57 = vmul.f32 %v2028_v51, %v661_v53  ;;  %v2034_v51 = vpop.eup %2033 }
 0x148   : > { %v1126_v54 = vmul.f32 %v2034_v51, %v1123_v47  ;;  %vm1132_vm13 = vweird.f32 %v2034_v51 }
 0x149   : > { %v667_v63 = vsub.f32 0.0, %v662_v57  ;;  %v2467_v0 = vsub.f32 %v2462_v55, %v662_v57  ;;  %vm1133_vm0 = vmor %vm1131_vm12, %vm1132_vm13 }
 0x14b   : > { %v668_v26 = vpack.c.bf16 %v667_v63, %v667_v63  ;;  %v690_v2 = vpack.c.bf16 %v2467_v0, %v2467_v0 }
 0x14c   : > { %v659_v3 = vpop.f32.mrf.mxu1 }
 0x14d   : > { %v2471_v4 = vpop.xlane.xlu2 %531  ;;  %v674_v5 = vsel %vm673_vm10, %v668_v26, 0  ;;  %v695_v6 = vsel %vm673_vm10, %v690_v2, 0  ;;  %v2494_v3 = vpop.permute.xlu1 %1167 }
 0x14e   : > { %683 = vmatpush.bf16.msra.mxu2 %v674_v5  ;;  %704 = vmatpush.bf16.msra.mxu3 %v695_v6 }
 0x151   : > { %1875 = vmatmul.msk.bf16.vlgmr.msra.gmra.mxu2 %vm669_vm11, %v668_v26  ;;  %v1127_v26 = vmul.f32 %v2034_v51, %v1126_v54 }
 0x153   : > { %v1128_v5 = vmul.f32 0.5, %v1127_v26 }
 0x155   : > { %v1033_v8 = vpop.permute.xlu2 %1032  ;;  %v1129_v7 = vsub.f32 1.5, %v1128_v5 }
 0x156   : > { %v1036_v10 = vmul.f32 %v1033_v8, %v2396_v11 }
 0x158   : > { %v1043_v12 = vpack.c.bf16 %v1036_v10, %v1035_v9  ;;  %v1130_v10 = vmul.f32 %v2034_v51, %v1129_v7 }
 0x15a   : > { %1044 = vxpose.xlu1.c.b16.start.end [1/1] (short) (narrow) %v1043_v12, 16  ;;  %v1134_v13 = vsel %vm1133_vm0, %v2034_v51, %v1130_v10 }
 0x163   : > { %v782_v35 = vpop.f32.mrf.mxu1 }
 0x164   : > { %v786_v37 = vmul.f32 %v782_v35, %v2457_v50 }
 0x165   : > { %v622_v15 = vpop.f32.mrf.mxu0 }
 0x166   : > { %v627_v16 = vsub.f32 %v606_v14, %v622_v15  ;;  %v2484_v27 = vmul.f32 %v2030_v31, %v786_v37 }
 0x168   : > { %v749_v20 = vpack.c.bf16 %v627_v16, %v627_v16  ;;  %v2501_v16 = vmul.f32 %v1134_v13, %v2336_v21 }
 0x16a   : > { %v754_v24 = vsel %vm673_vm10, %v749_v20, 0 }
 0x16b   : > { %763 = vmatpush.bf16.msrb.mxu3 %v754_v24  ;;  %v784_v32 = vpop.f32.mrf.mxu1 }
 0x16d   : > { %v2508_v35 = vpop.f32.mrf.mxu0 }
 0x184   : > { %v2492_v63 = vpop.permute.xlu0 %1378 }
 0x18c   : > { %v2496_v8 = vpop.permute.xlu0 %1172 }
 0x18e   : > { %v1122_v29 = vpop.xlane.xlu2 %1121 }
 0x18f   : > { %v1124_v49 = vadd.f32 1e-06, %v1122_v29 }
 0x191   : > { %2035 = vrsqrt.f32 %v1124_v49  ;;  %vm1141_vm14 = vweird.f32 %v1124_v49 }
 0x194   : > { %v1584_v15 = vpop.permute.xlu0 %1583 }
 0x195   : > { %v1591_v30 = vmul.f32 %v1584_v15, %v2501_v16 }
 0x197   : > { %v2036_v53 = vpop.eup %2035 }
 0x198   : > { %v1136_v57 = vmul.f32 %v2036_v53, %v1124_v49  ;;  %vm1142_vm15 = vweird.f32 %v2036_v53 }
 0x199   : > { %vm1143_vm2 = vmor %vm1141_vm14, %vm1142_vm15 }
 0x19a   : > { %v1137_v2 = vmul.f32 %v2036_v53, %v1136_v57 }
 0x19c   : > { %v1138_v6 = vmul.f32 0.5, %v1137_v2 }
 0x19e   : > { %v1139_v19 = vsub.f32 1.5, %v1138_v6  ;;  %v945_v6 = vpack.c.bf16 %v2396_v11, %v2372_v56 }
 0x1a0   : > { %v1140_v12 = vmul.f32 %v2036_v53, %v1139_v19  ;;  %v950_v13 = vsel %vm529_vm1, %v945_v6, 0 }
 0x1a2   : > { %v1144_v14 = vsel %vm1143_vm2, %v2036_v53, %v1140_v12 }
 0x1a3   : > { %v2504_v20 = vmul.f32 %v1144_v14, %v2417_v28  ;;  %v771_v28 = vsel %vm529_vm1, %v2439_v41, 0  ;;  %v533_v14 = vadd.f32 1e-06, %v2471_v4 }
 0x1a5   : > { %vm540_vm3 = vweird.f32 %v533_v14 }
 0x1b4   : > { %1588 = vperm.xlu1 %2001, %v2032_v61  }
 0x1d4   : > { %v685_v38 = vpop.f32.mrf.mxu2 }
 0x1d5   : > { %v689_v40 = vpack.c.bf16 %v685_v38, %v685_v38 }
 0x1d7   : > { %1876 = vmatmul.msk.bf16.vlgmr.msra.gmra.mxu3 %vm669_vm11, %v689_v40  ;;  %v711_v45 = vsel %vm673_vm10, %v689_v40, 0 }
 0x1d8   : > { %720 = vmatpush.bf16.msrb.mxu0 %v711_v45 }
 0x1db   : > { %1877 = vmatmul.msk.bf16.vlgmr.msrb.gmra.mxu0 %vm669_vm11, %v689_v40 }
 0x1dc   : > { %v687_v46 = vpop.f32.mrf.mxu2 }
 0x206   : > { %v2498_v9 = vpop.trf.xlu1 }
 0x226   : > { %v1589_v24 = vpop.permute.xlu1 %1588 }
 0x227   : > { %v1592_v31 = vmul.f32 %v1589_v24, %v2504_v20  ;;  %v796_v24 = vpack.c.bf16 %v2484_v27, %v2484_v27 }
 0x229   : > { %v1599_v33 = vpack.c.bf16 %v1592_v31, %v1591_v30 }
 0x22b   : > { %1600 = vxpose.xlu0.c.b16.start.end [1/1] (short) (narrow) %v1599_v33, 16 }
 0x258   : > { %v722_v37 = vpop.f32.mrf.mxu0 }
 0x259   : > { %v726_v45 = vpack.c.bf16 %v722_v37, %v722_v37 }
 0x25a   : > { %v706_v32 = vpop.f32.mrf.mxu3 }
 0x25b   : > { %v710_v61 = vadd.f32 %v706_v32, %v2467_v0  ;;  %v822_v0 = vsel %vm633_vm8, %v2454_v48, -1e+30 }
 0x25c   : > { %v823_v51 = vmul.f32 1.442695, %v822_v0 }
 0x25d   : > { %v727_v38 = vpack.c.bf16 %v710_v61, %v710_v61 }
 0x25e   : > { %2037 = vpow2.f32 %v823_v51 }
 0x25f   : > { %v732_v21 = vsel %vm673_vm10, %v727_v38, 0  ;;  %2039 = vrsqrt.f32 %v533_v14 }
 0x260   : > { %v724_v40 = vpop.f32.mrf.mxu0  ;;  %741 = vmatpush.bf16.msrb.mxu2 %v732_v21 }
 0x262   : > { %v708_v46 = vpop.f32.mrf.mxu3 }
 0x263   : > { %1878 = vmatmul.msk.bf16.vlgmr.msrb.gmra.mxu2 %vm669_vm11, %v726_v45 }
 0x264   : > { %832 = vmatpush.bf16.xpose.msra.mxu2 %v771_v28  ;;  %v2038_v26 = vpop.eup %2037 }
 0x265   : > { %v2040_v30 = vpop.eup %2039 }
 0x266   : > { %v535_v33 = vmul.f32 %v2040_v30, %v533_v14  ;;  %vm541_vm4 = vweird.f32 %v2040_v30 }
 0x267   : > { %vm542_vm5 = vmor %vm540_vm3, %vm541_vm4 }
 0x268   : > { %v536_v37 = vmul.f32 %v2040_v30, %v535_v33 }
 0x26a   : > { %v537_v32 = vmul.f32 0.5, %v536_v37 }
 0x26c   : > { %v538_v4 = vsub.f32 1.5, %v537_v32 }
 0x26e   : > { %v539_v21 = vmul.f32 %v2040_v30, %v538_v4 }
 0x270   : > { %v543_v27 = vsel %vm542_vm5, %v2040_v30, %v539_v21 }
 0x271   : > { %v544_v45 = vmul.f32 %v543_v27, %v2390_v1  ;;  %v970_v1 = vsub.f32 %v2464_v58, %v2364_v44 }
 0x273   : > { %1882 = vmatmul.msk.bf16.vlgmr.msra.gmra.mxu2 %vm529_vm1, %v2439_v41  ;;  %v545_v46 = vmul.f32 0.25, %v544_v45 }
 0x2e6   : > { %v743_v29 = vpop.f32.mrf.mxu2 }
 0x2e7   : > { %v747_v47 = vadd.f32 %v743_v29, %v710_v61  ;;  %v944_v29 = vpack.c.bf16 %v545_v46, %v545_v46 }
 0x2e9   : > { %v748_v49 = vpack.c.bf16 %v747_v47, %v747_v47  ;;  %v517_v47 = vld [vmem:[%s2298_s0 + $0x8] sm:$0xff] }
 0x2eb   : > { %1879 = vmatmul.msk.bf16.vlgmr.msrb.gmra.mxu3 %vm669_vm11, %v748_v49  ;;  %v607_v49 = vmul.f32 %v2457_v50, %v517_v47 }
 0x2ed   : > { %v628_v0 = vsub.f32 %v607_v49, %v2508_v35 }
 0x2ee   : > { %v745_v53 = vpop.f32.mrf.mxu2 }
 0x2f6   : > { %v834_v54 = vpop.f32.mrf.mxu2 }
 0x2f7   : > { %v838_v57 = vmul.f32 %v834_v54, %v2457_v50 }
 0x2f9   : > { %v839_v2 = vmul.f32 %v2038_v26, %v838_v57 }
 0x2fb   : > { %v840_v41 = vsub.f32 %v2462_v55, %v839_v2  ;;  %v841_v5 = vsub.f32 0.0, %v839_v2  ;;  %v941_v2 = vadd.s32 1, %v2444_v42 }
 0x2fd   : > { %v842_v7 = vpack.c.bf16 %v841_v5, %v841_v5  ;;  %v862_v19 = vpack.c.bf16 %v840_v41, %v840_v41  ;;  %v942_v5 = vmul.u32 2, %v941_v2 }
 0x2fe   : > { %v836_v10 = vpop.f32.mrf.mxu2 }
 0x2ff   : > { %v846_v48 = vsel %vm673_vm10, %v842_v7, 0  ;;  %v867_v12 = vsel %vm673_vm10, %v862_v19, 0  ;;  %vm2552_vm6 = vcmp.lt.s32.totalorder %v2446_v43, %v942_v5 }
 0x300   : > { %855 = vmatpush.bf16.msra.mxu3 %v846_v48  ;;  %876 = vmatpush.bf16.msra.mxu1 %v867_v12 }
 0x303   : > { %1883 = vmatmul.msk.bf16.vlgmr.msra.gmra.mxu3 %vm669_vm11, %v842_v7  ;;  %v971_v7 = vsel %vm2552_vm6, %v970_v1, -1e+30 }
 0x304   : > { %959 = vmatpush.bf16.xpose.msrb.mxu1 %v950_v13  ;;  %v972_v12 = vmul.f32 1.442695, %v971_v7 }
 0x306   : > { %2041 = vpow2.f32 %v972_v12 }
 0x30c   : > { %v2042_v14 = vpop.eup %2041 }
 0x36e   : > { %v2531_v15 = vpop.f32.mrf.mxu3 }
 0x36f   : > { %v797_v56 = vpack.c.bf16 %v2531_v15, %v2531_v15 }
 0x371   : > { %v802_v11 = vsel %vm673_vm10, %v797_v56, 0 }
 0x372   : > { %811 = vmatpush.bf16.msra.mxu0 %v802_v11  ;;  %v982_v11 = vmul.f32 %v2404_v22, %v545_v46  ;;  %v1204_v46 = vsub.f32 %v2490_v52, %v2411_v18 }
 0x375   : > { %1881 = vmatmul.msk.bf16.vlgmr.msra.gmra.mxu0 %vm669_vm11, %v796_v24  ;;  %v983_v24 = vpack.c.bf16 %v982_v11, %v982_v11 }
 0x376   : > { %v767_v31 = vpop.f32.mrf.mxu3 }
 0x386   : > { %v857_v61 = vpop.f32.mrf.mxu3 }
 0x387   : > { %v861_v38 = vpack.c.bf16 %v857_v61, %v857_v61  ;;  %v1037_v61 = vrot.slane %v2354_v34, 7 }
 0x389   : > { %1884 = vmatmul.msk.bf16.vlgmr.msra.gmra.mxu1 %vm669_vm11, %v861_v38  ;;  %v883_v40 = vsel %vm673_vm10, %v861_v38, 0  ;;  %1919 = vpush %v1037_v61 }
 0x38a   : > { %892 = vmatpush.bf16.msrb.mxu0 %v883_v40 }
 0x38d   : > { %1885 = vmatmul.msk.bf16.vlgmr.msrb.gmra.mxu0 %vm669_vm11, %v861_v38  ;;  %v1208_v38 = vpack.c.bf16 %v2501_v16, %v2501_v16 }
 0x38e   : > { %v859_v28 = vpop.f32.mrf.mxu3 }
 0x38f   : > { %v1210_v40 = vsel %vm529_vm1, %v1208_v38, 0  ;;  %v1593_v28 = vrot.slane %v2435_v39, 7 }
 0x391   : > { %1921 = vpush %v1593_v28 }
 0x399   : > { %1888 = vmatmul.msk.bf16.vlgmr.msrb.gmra.mxu1 %vm529_vm1, %v944_v29 }
 0x3ba   : > { %s1920_s26 = spop %1919 }
 0x3c2   : > { %s1922_s11 = spop %1921 }
 0x3f2   : > { %v813_v51 = vpop.f32.mrf.mxu0 }
 0x3f3   : > { %v817_v53 = vsub.f32 %v628_v0, %v813_v51 }
 0x3f5   : > { %v921_v54 = vpack.c.bf16 %v817_v53, %v817_v53 }
 0x3f7   : > { %v926_v57 = vsel %vm673_vm10, %v921_v54, 0 }
 0x3f8   : > { %935 = vmatpush.bf16.msrb.mxu3 %v926_v57 }
 0x3fa   : > { %v815_v26 = vpop.f32.mrf.mxu0 }
 0x406   : > { %v878_v50 = vpop.f32.mrf.mxu1 }
 0x407   : > { %v882_v35 = vadd.f32 %v878_v50, %v840_v41 }
 0x409   : > { %v899_v19 = vpack.c.bf16 %v882_v35, %v882_v35 }
 0x40a   : > { %v894_v10 = vpop.f32.mrf.mxu0 }
 0x40b   : > { %v904_v48 = vsel %vm673_vm10, %v899_v19, 0  ;;  %v898_v13 = vpack.c.bf16 %v894_v10, %v894_v10  ;;  %v1164_v10 = vmul.f32 %v2408_v23, %v2504_v20  ;;  %v1086_v23 = vld [vmem:[%s2298_s0 + $0x10] sm:$0xff] }
 0x40c   : > { %913 = vmatpush.bf16.msrb.mxu2 %v904_v48 }
 0x40e   : > { %v880_v44 = vpop.f32.mrf.mxu1 }
 0x40f   : > { %1886 = vmatmul.msk.bf16.vlgmr.msrb.gmra.mxu2 %vm669_vm11, %v898_v13  ;;  %v1163_v44 = vmul.f32 %v2406_v17, %v2501_v16 }
 0x410   : > { %1012 = vmatpush.bf16.msra.mxu2 %v2385_v62 }
 0x412   : > { %v896_v58 = vpop.f32.mrf.mxu0 }
 0x413   : > { %v1177_v58 = vpack.c.bf16 %v1164_v10, %v1163_v44 }
 0x416   : > { %v961_v56 = vpop.f32.mrf.mxu1 }
 0x417   : > { %v974_v41 = vmul.f32 %v2042_v14, %v961_v56  ;;  %v1175_v14 = vmul.f32 %v2494_v3, %v1086_v23 }
 0x419   : > { %v984_v27 = vpack.c.bf16 %v974_v41, %v974_v41 }
 0x41e   : > { %v963_v30 = vpop.f32.mrf.mxu1 }
 0x41f   : > { %1890 = vmatmul.msk.bf16.vlgmr.msra.gmra.mxu2 %vm529_vm1, %v983_v24 }
 0x492   : > { %v915_v31 = vpop.f32.mrf.mxu2 }
 0x493   : > { %v919_v33 = vadd.f32 %v915_v31, %v882_v35 }
 0x495   : > { %v920_v37 = vpack.c.bf16 %v919_v33, %v919_v33 }
 0x497   : > { %1887 = vmatmul.msk.bf16.vlgmr.msrb.gmra.mxu3 %vm669_vm11, %v920_v37  ;;  %v1328_v37 = vpack.c.bf16 %v2504_v20, %v2504_v20 }
 0x49a   : > { %v917_v62 = vpop.f32.mrf.mxu2 }
 0x4a2   : > { %v1014_v32 = vpop.f32.mrf.mxu2 }
 0x4aa   : > { %v1016_v4 = vpop.f32.mrf.mxu2 }
 0x51a   : > { %v937_v21 = vpop.f32.mrf.mxu3 }
 0x51b   : > { %v985_v22 = vpack.c.bf16 %v937_v21, %v2531_v15  ;;  %v1039_v15 = vstv %s1920_s26 }
 0x51c   : > { %v1041_v47 = vmul.f32 %v1039_v15, %v2377_v59  ;;  %v1042_v53 = vmul.f32 %v1039_v15, %v2379_v60 }
 0x51d   : > { %996 = vmatpush.bf16.msra.mxu0 %v985_v22  ;;  %1070 = vmatpush.bf16.msra.mxu3 %v985_v22  ;;  %v1330_v22 = vsel %vm529_vm1, %v1328_v37, 0 }
 0x520   : > { %1889 = vmatmul.msk.bf16.vlgmr.msra.gmra.mxu0 %vm529_vm1, %v984_v27  ;;  %1891 = vmatmul.msk.bf16.vlgmr.msra.gmra.mxu3 %vm529_vm1, %v2498_v9  ;;  %v1205_v9 = vsel %vm633_vm8, %v1204_v46, -1e+30  ;;  %v1352_v27 = vmul.f32 1.442695, %v2414_v25  ;;  %v1381_v25 = vsel %vm633_vm8, %v2492_v63, -1e+30 }
 0x521   : > { %1219 = vmatpush.bf16.xpose.msrb.mxu0 %v1210_v40  ;;  %v1206_v51 = vmul.f32 1.442695, %v1205_v9 }
 0x522   : > { %v939_v34 = vpop.f32.mrf.mxu3 }
 0x523   : > { %2043 = vpow2.f32 %v1206_v51 }
 0x524   : > { %2045 = vpow2.f32 %v1352_v27 }
 0x529   : > { %v2044_v26 = vpop.eup %2043 }
 0x52a   : > { %v2046_v15 = vpop.eup %2045 }
 0x530   : > { %1895 = vmatmul.msk.bf16.vlgmr.msrb.gmra.mxu0 %vm529_vm1, %v1208_v38 }
 0x59d   : > { %v998_v45 = vpop.f32.mrf.mxu0 }
 0x59e   : > { %v1015_v29 = vadd.f32 %v1014_v32, %v998_v45 }
 0x5a0   : > { %1082 = vst.msk [vmem:[%s2310_s8] sm:$0xff] %vm1079_vm7, %v1015_v29 }
 0x5a3   : > { %v1072_v49 = vpop.f32.mrf.mxu3 }
 0x5a4   : > { %v1077_v0 = vadd.f32 %v1072_v49, %v1041_v47 }
 0x5a5   : > { %v1000_v39 = vpop.f32.mrf.mxu0 }
 0x5a6   : > { %1080 = vst.msk [vmem:[#allocation2] sm:$0xff] %vm1079_vm7, %v1077_v0  ;;  %v1382_v0 = vmul.f32 1.442695, %v1381_v25 }
 0x5a8   : > { %2047 = vpow2.f32 %v1382_v0 }
 0x5ab   : > { %v1074_v54 = vpop.f32.mrf.mxu3 }
 0x5ac   : > { %v1078_v52 = vadd.f32 %v1074_v54, %v1042_v53 }
 0x5ad   : > { %v1221_v57 = vpop.f32.mrf.mxu0  ;;  %v2587_v50 = vld [vmem:[#allocation2] sm:$0xff] }
 0x5ae   : > { %1081 = vst.msk [vmem:[#allocation2 + $0x8] sm:$0xff] %vm1079_vm7, %v1078_v52  ;;  %v1225_v59 = vmul.f32 %v1221_v57, %v2494_v3  ;;  %v2048_v54 = vpop.eup %2047 }
 0x5b0   : > { %v1226_v2 = vmul.f32 %v2044_v26, %v1225_v59  ;;  %v1501_v26 = vpack.c.bf16 %v2504_v20, %v2501_v16 }
 0x5b2   : > { %v1227_v5 = vsub.f32 %v2462_v55, %v1226_v2  ;;  %v1228_v1 = vsub.f32 0.0, %v1226_v2 }
 0x5b4   : > { %v1229_v35 = vpack.c.bf16 %v1228_v1, %v1228_v1  ;;  %v1249_v7 = vpack.c.bf16 %v1227_v5, %v1227_v5  ;;  %v1506_v1 = vsel %vm529_vm1, %v1501_v26, 0 }
 0x5b5   : > { %v1223_v19 = vpop.f32.mrf.mxu0  ;;  %v2589_v60 = vld [vmem:[#allocation2 + $0x8] sm:$0xff] }
 0x5b6   : > { %v1233_v48 = vsel %vm673_vm10, %v1229_v35, 0  ;;  %v1254_v12 = vsel %vm673_vm10, %v1249_v7, 0  ;;  %v2597_v13 = vpack.c.bf16 %v2589_v60, %v2587_v50 }
 0x5b7   : > { %1242 = vmatpush.bf16.msrb.mxu2 %v1233_v48  ;;  %1263 = vmatpush.bf16.msrb.mxu3 %v1254_v12 }
 0x5b8   : > { %1189 = vmatpush.bf16.msra.mxu1 %v2597_v13 }
 0x5ba   : > { %1896 = vmatmul.msk.bf16.vlgmr.msrb.gmra.mxu2 %vm669_vm11, %v1229_v35  ;;  %v1101_v35 = vpop.xlane.xlu2 %1100 }
 0x5bb   : > { %1339 = vmatpush.bf16.xpose.msra.mxu3 %v1210_v40  ;;  %1894 = vmatmul.msk.bf16.vlgmr.msra.gmra.mxu1 %vm529_vm1, %v1177_v58 }
 0x638   : > { %v1191_v56 = vpop.f32.mrf.mxu1 }
 0x639   : > { %v1196_v41 = vsub.f32 %v1175_v14, %v1191_v56 }
 0x63b   : > { %v1308_v11 = vpack.c.bf16 %v1196_v41, %v1196_v41 }
 0x63d   : > { %v1313_v24 = vsel %vm673_vm10, %v1308_v11, 0  ;;  %v1244_v30 = vpop.f32.mrf.mxu2 }
 0x63e   : > { %v1248_v17 = vpack.c.bf16 %v1244_v30, %v1244_v30  ;;  %1322 = vmatpush.bf16.msra.mxu2 %v1313_v24 }
 0x640   : > { %1897 = vmatmul.msk.bf16.vlgmr.msrb.gmra.mxu3 %vm669_vm11, %v1248_v17  ;;  %v1270_v31 = vsel %vm673_vm10, %v1248_v17, 0  ;;  %v2613_v3 = vpop.f32.mrf.mxu1 }
 0x641   : > { %1279 = vmatpush.bf16.msrb.mxu1 %v1270_v31 }
 0x644   : > { %1898 = vmatmul.msk.bf16.vlgmr.msrb.gmra.mxu1 %vm669_vm11, %v1248_v17 }
 0x645   : > { %v1246_v33 = vpop.f32.mrf.mxu2 }
 0x650   : > { %1901 = vmatmul.msk.bf16.vlgmr.msra.gmra.mxu3 %vm529_vm1, %v1328_v37 }
 0x6c1   : > { %v1281_v62 = vpop.f32.mrf.mxu1 }
 0x6c2   : > { %v1285_v40 = vpack.c.bf16 %v1281_v62, %v1281_v62 }
 0x6c3   : > { %v1265_v32 = vpop.f32.mrf.mxu3 }
 0x6c4   : > { %v1269_v4 = vadd.f32 %v1265_v32, %v1227_v5 }
 0x6c6   : > { %v1286_v61 = vpack.c.bf16 %v1269_v4, %v1269_v4 }
 0x6c8   : > { %v1291_v38 = vsel %vm673_vm10, %v1286_v61, 0 }
 0x6c9   : > { %v1283_v21 = vpop.f32.mrf.mxu1  ;;  %1300 = vmatpush.bf16.msra.mxu0 %v1291_v38 }
 0x6cb   : > { %v1267_v34 = vpop.f32.mrf.mxu3 }
 0x6cc   : > { %1899 = vmatmul.msk.bf16.vlgmr.msra.gmra.mxu0 %vm669_vm11, %v1285_v40 }
 0x6cd   : > { %1391 = vmatpush.bf16.xpose.msrb.mxu0 %v1330_v22 }
 0x6d3   : > { %v1341_v28 = vpop.f32.mrf.mxu3 }
 0x6d4   : > { %v1345_v45 = vmul.f32 %v1341_v28, %v2496_v8 }
 0x6d6   : > { %v1354_v46 = vmul.f32 %v2046_v15, %v1345_v45 }
 0x6d8   : > { %v1355_v19 = vpack.c.bf16 %v1354_v46, %v1354_v46  ;;  %v1536_v46 = vpop.permute.xlu0 %1535 }
 0x6db   : > { %v1343_v29 = vpop.f32.mrf.mxu3 }
 0x6dc   : > { %1903 = vmatmul.msk.bf16.vlgmr.msrb.gmra.mxu0 %vm529_vm1, %v1328_v37  ;;  %v1087_v37 = vld [vmem:[%s2298_s0 + $0x18] sm:$0xff]  ;;  %s1915_s0 = sshll.u32 %s2135_s28, 2 }
 0x6dd   : > { %v1176_v62 = vmul.f32 %v2496_v8, %v1087_v37  ;;  %s1650_s30 = sadd.s32 %s1915_s0, %s2268_s21 }
 0x6de   : > { %s1916_s14 = sshll.u32 %s1650_s30, 3 }
 0x6df   : > { %v1197_v32 = vsub.f32 %v1176_v62, %v2613_v3  ;;  %s1652_s9 = scalar_lea.hbm %s2719_s7, %s1916_s14 }
 0x6e0   : > { %s1655_s23 = sshll.u32 %s1652_s9, 4  ;;  %s1656_s23 = int_to_ptr.hbm [resolvable:$true] %s1655_s23 }
 0x6e1   : > { %s2067_s28 = sshra.s32 %s1656_s23, 4  ;;  %s2068_s28 = int_to_ptr.hbm [resolvable:$true] %s2067_s28 }
 0x6e2   : > { %s2069_s21 = scalar_lea.hbm %s2068_s28, 16  ;;  %p2074_p6 = scmp.lt.s32.totalorder %s2068_s28, %s2719_s7 }
 0x6e3   : > { %p2070_p2 = scmp.ne.s32.totalorder %s2068_s28, %s2069_s21  ;;  %p2075_p7 = scmp.lt.s32.totalorder %s2073_s15, %s2069_s21 }
 0x6e5   : > { %p2071_p4 = pnand %p2070_p2, %p2246_p3  ;;  %p2076_p9 = por %p2075_p7, %p2074_p6 }
 0x6e7   : > { %p2072_p5 = pneg %p2071_p4 }
 0x6e9   : > { %p2077_p10 = pnand %p2076_p9, %p2072_p5 }
 0x749   : > { %v1302_v47 = vpop.f32.mrf.mxu0 }
 0x74a   : > { %v1306_v9 = vadd.f32 %v1302_v47, %v1269_v4 }
 0x74c   : > { %v1307_v49 = vpack.c.bf16 %v1306_v9, %v1306_v9 }
 0x74e   : > { %1900 = vmatmul.msk.bf16.vlgmr.msra.gmra.mxu2 %vm669_vm11, %v1307_v49 }
 0x751   : > { %v1304_v51 = vpop.f32.mrf.mxu0 }
 0x759   : > { %v1393_v39 = vpop.f32.mrf.mxu0 }
 0x75a   : > { %v1397_v53 = vmul.f32 %v1393_v39, %v2496_v8 }
 0x75c   : > { %v1398_v52 = vmul.f32 %v2048_v54, %v1397_v53  ;;  %v1524_v54 = vpop.permute.xlu2 %1523 }
 0x75e   : > { %v1399_v57 = vsub.f32 %v2462_v55, %v1398_v52  ;;  %v1400_v59 = vsub.f32 0.0, %v1398_v52  ;;  %v1102_v55 = vadd.f32 1e-06, %v1101_v35 }
 0x760   : > { %v1401_v2 = vpack.c.bf16 %v1400_v59, %v1400_v59  ;;  %v1421_v5 = vpack.c.bf16 %v1399_v57, %v1399_v57  ;;  %2049 = vrsqrt.f32 %v1102_v55  ;;  %vm1109_vm8 = vweird.f32 %v1102_v55 }
 0x761   : > { %v1395_v42 = vpop.f32.mrf.mxu0 }
 0x762   : > { %v1405_v43 = vsel %vm673_vm10, %v1401_v2, 0  ;;  %v1426_v63 = vsel %vm673_vm10, %v1421_v5, 0  ;;  %v1608_v42 = vpop.trf.xlu0 }
 0x763   : > { %1414 = vmatpush.bf16.msrb.mxu2 %v1405_v43  ;;  %1435 = vmatpush.bf16.msrb.mxu3 %v1426_v63 }
 0x766   : > { %1904 = vmatmul.msk.bf16.vlgmr.msrb.gmra.mxu2 %vm669_vm11, %v1401_v2  ;;  %v2050_v10 = vpop.eup %2049 }
 0x767   : > { %1515 = vmatpush.bf16.xpose.msra.mxu3 %v1506_v1  ;;  %v1104_v12 = vmul.f32 %v2050_v10, %v1102_v55  ;;  %vm1110_vm9 = vweird.f32 %v2050_v10  ;;  %v1595_v1 = vstv %s1922_s11 }
 0x768   : > { %vm1111_vm12 = vmor %vm1109_vm8, %vm1110_vm9 }
 0x769   : > { %v1105_v44 = vmul.f32 %v2050_v10, %v1104_v12 }
 0x76b   : > { %v1106_v58 = vmul.f32 0.5, %v1105_v44 }
 0x76d   : > { %v1107_v23 = vsub.f32 1.5, %v1106_v58 }
 0x76f   : > { %v1108_v41 = vmul.f32 %v2050_v10, %v1107_v23 }
 0x771   : > { %v1112_v24 = vsel %vm1111_vm12, %v2050_v10, %v1108_v41 }
 0x772   : > { %v1113_v17 = vmul.f32 %v1112_v24, %v2428_v36 }
 0x774   : > { %v1114_v31 = vmul.f32 0.25, %v1113_v17 }
 0x776   : > { %v1500_v33 = vpack.c.bf16 %v1114_v31, %v1114_v31  ;;  %v1538_v29 = vmul.f32 %v1536_v46, %v1114_v31 }
 0x778   : > { %v1539_v47 = vpack.c.bf16 %v1538_v29, %v1538_v29 }
 0x7d1   : > { %v2634_v7 = vpop.f32.mrf.mxu2 }
 0x7d2   : > { %v1356_v16 = vpack.c.bf16 %v2634_v7, %v2634_v7 }
 0x7d4   : > { %v1361_v20 = vsel %vm673_vm10, %v1356_v16, 0 }
 0x7d5   : > { %1370 = vmatpush.bf16.msra.mxu1 %v1361_v20 }
 0x7d8   : > { %1902 = vmatmul.msk.bf16.vlgmr.msra.gmra.mxu1 %vm669_vm11, %v1355_v19 }
 0x7d9   : > { %v1326_v48 = vpop.f32.mrf.mxu2 }
 0x7e9   : > { %v1416_v14 = vpop.f32.mrf.mxu2 }
 0x7ea   : > { %v1420_v56 = vpack.c.bf16 %v1416_v14, %v1416_v14 }
 0x7ec   : > { %1905 = vmatmul.msk.bf16.vlgmr.msrb.gmra.mxu3 %vm669_vm11, %v1420_v56  ;;  %v1442_v11 = vsel %vm673_vm10, %v1420_v56, 0 }
 0x7ed   : > { %1451 = vmatpush.bf16.msrb.mxu1 %v1442_v11 }
 0x7f0   : > { %1906 = vmatmul.msk.bf16.vlgmr.msrb.gmra.mxu1 %vm669_vm11, %v1420_v56 }
 0x7f1   : > { %v1418_v30 = vpop.f32.mrf.mxu2 }
 0x7fc   : > { %1909 = vmatmul.msk.bf16.vlgmr.msra.gmra.mxu3 %vm529_vm1, %v1500_v33 }
 0x855   : > { %v1372_v4 = vpop.f32.mrf.mxu1 }
 0x856   : > { %v1376_v61 = vsub.f32 %v1197_v32, %v1372_v4 }
 0x858   : > { %v1480_v38 = vpack.c.bf16 %v1376_v61, %v1376_v61 }
 0x85a   : > { %v1485_v21 = vsel %vm673_vm10, %v1480_v38, 0 }
 0x85b   : > { %1494 = vmatpush.bf16.msra.mxu2 %v1485_v21 }
 0x85d   : > { %v1374_v22 = vpop.f32.mrf.mxu1 }
 0x86d   : > { %v1453_v40 = vpop.f32.mrf.mxu1 }
 0x86e   : > { %v1457_v15 = vpack.c.bf16 %v1453_v40, %v1453_v40 }
 0x86f   : > { %v1437_v27 = vpop.f32.mrf.mxu3 }
 0x870   : > { %v1441_v34 = vadd.f32 %v1437_v27, %v1399_v57 }
 0x872   : > { %v1458_v36 = vpack.c.bf16 %v1441_v34, %v1441_v34 }
 0x874   : > { %v1463_v28 = vsel %vm673_vm10, %v1458_v36, 0 }
 0x875   : > { %v1455_v45 = vpop.f32.mrf.mxu1  ;;  %1472 = vmatpush.bf16.msra.mxu0 %v1463_v28 }
 0x877   : > { %v1439_v8 = vpop.f32.mrf.mxu3 }
 0x878   : > { %1907 = vmatmul.msk.bf16.vlgmr.msra.gmra.mxu0 %vm669_vm11, %v1457_v15 }
 0x879   : > { %1568 = vmatpush.bf16.msrb.mxu0 %v2597_v13  ;;  %v1526_v13 = vsub.f32 %v1524_v54, %v2411_v18 }
 0x87b   : > { %v1527_v52 = vsel %vm2552_vm6, %v1526_v13, -1e+30 }
 0x87c   : > { %v1528_v57 = vmul.f32 1.442695, %v1527_v52 }
 0x87e   : > { %2051 = vpow2.f32 %v1528_v57 }
 0x87f   : > { %v1517_v3 = vpop.f32.mrf.mxu3 }
 0x884   : > { %v2052_v59 = vpop.eup %2051 }
 0x885   : > { %v1530_v26 = vmul.f32 %v2052_v59, %v1517_v3 }
 0x887   : > { %v1519_v9 = vpop.f32.mrf.mxu3  ;;  %v1540_v43 = vpack.c.bf16 %v1530_v26, %v1530_v26 }
 0x888   : > { %1911 = vmatmul.msk.bf16.vlgmr.msrb.gmra.mxu0 %vm529_vm1, %v1539_v47 }
 0x8f5   : > { %v1474_v49 = vpop.f32.mrf.mxu0 }
 0x8f6   : > { %v1478_v25 = vadd.f32 %v1474_v49, %v1441_v34 }
 0x8f8   : > { %v1479_v0 = vpack.c.bf16 %v1478_v25, %v1478_v25 }
 0x8fa   : > { %1908 = vmatmul.msk.bf16.vlgmr.msra.gmra.mxu2 %vm669_vm11, %v1479_v0 }
 0x8fd   : > { %v1476_v51 = vpop.f32.mrf.mxu0 }
 0x905   : > { %v1570_v39 = vpop.f32.mrf.mxu0 }
 0x90d   : > { %v1572_v53 = vpop.f32.mrf.mxu0 }
 0x97d   : > { %v1496_v2 = vpop.f32.mrf.mxu2 }
 0x97e   : > { %v1541_v5 = vpack.c.bf16 %v1496_v2, %v2634_v7 }
 0x980   : > { %1552 = vmatpush.bf16.msra.mxu1 %v1541_v5  ;;  %1626 = vmatpush.bf16.msrb.mxu2 %v1541_v5 }
 0x983   : > { %1910 = vmatmul.msk.bf16.vlgmr.msra.gmra.mxu1 %vm529_vm1, %v1540_v43  ;;  %1912 = vmatmul.msk.bf16.vlgmr.msrb.gmra.mxu2 %vm529_vm1, %v1608_v42 }
 0x985   : > { %v1498_v18 = vpop.f32.mrf.mxu2 }
 0xa00   : > { %v1554_v6 = vpop.f32.mrf.mxu1 }
 0xa01   : > { %v1571_v63 = vadd.f32 %v1570_v39, %v1554_v6 }
 0xa03   : > { %1637 = vst.msk [vmem:[%s2310_s8 + $0x8] sm:$0xff] %vm1079_vm7, %v1571_v63 }
 0xa04   : > { %2080 = shalt.err (!%p2077_p10)
}
 0xa05   : > { %s2153_s8 = smov 128   ;;  %s2154_s27 = smov 8   ;;  %v1597_v35 = vmul.f32 %v1595_v1, %v2587_v50  ;;  %v1598_v20 = vmul.f32 %v1595_v1, %v2589_v60 }
 0xa06   : > { %1923 = dma.vmem_to_hbm [thread:$0]  (%p2246_p3), %s1654_s16, 256, %s1656_s23, %s1639_s29, %s2153_s8, %s2153_s8, %s2154_s27   ;;  %v1628_v55 = vpop.f32.mrf.mxu2 }
 0xa07   : > { %v1633_v7 = vadd.f32 %v1628_v55, %v1597_v35 }
 0xa08   : > { %v1556_v16 = vpop.f32.mrf.mxu1 }
 0xa09   : > { %1635 = vst.msk [vmem:[#allocation2] sm:$0xff] %vm1079_vm7, %v1633_v7 }
 0xa0e   : > { %v1630_v19 = vpop.f32.mrf.mxu2 }
 0xa0f   : > { %v1634_v10 = vadd.f32 %v1630_v19, %v1598_v20 }
 0xa11   : > { %1636 = vst.msk [vmem:[#allocation2 + $0x8] sm:$0xff] %vm1079_vm7, %v1634_v10 }
 0xa12 PF: > { %s2750_s24 = sld [smem:[#allocation10_spill]] }
 0xa13   : > { %s2751_s26 = sld [smem:[#allocation6_spill]] }
 0xa18   : > { %p1929_p11 = scmp.ge.s32.totalorder %s2750_s24, 2 }
 0xa19   : > { %s1670_s30 = sand.u32 1, %s2751_s26  }
 0xa1a   : > { %p1926_p3 = pnand %p1929_p11, %p2255_p8  ;;  %s1671_s14 = scalar_lea.sflag [#allocation4], %s1670_s30 }
 0xa1c   : > { %p1927_p12 = pneg %p1926_p3 }
 0xa1e   : > { %2114 = dma.done.wait (%p1927_p12), %s1671_s14, 256  }
 0xa1f   : > { %2116 = vsyncadd (%p1927_p12), %s1671_s14, 4294967040  ;;  %s20_s8 = sadd.s32 1, %s2750_s24   ;;  %s2753_s22 = sld [smem:[#allocation7_spill]] }
 0xa20   : > { %p17_p13 = scmp.ge.s32.totalorder %s20_s8, 10   ;;  %s2754_s26 = sld [smem:[#allocation15_spill]] }
 0xa21   : > { %s2755_s27 = sld [smem:[#allocation8_spill]]  ;;  %s2759_s24 = smov %s2123_s25 }
 0xa22   : > { %s2756_s28 = sld [smem:[#allocation9_spill]]  ;;  %19 = sbr.rel (!%p17_p13) target bundleno = 7 (0x7), region = 107 }
 0xa23   : > { %s2757_s29 = sld [smem:[#allocation11_spill]] }
 0xa24   : > { %s2758_s30 = sld [smem:[#allocation13_spill]] }
 0xa25   : > { %s2760_s25 = smov %s2753_s22 }
 0xa27   :  { %1677 = vsyncpa [#allocation4], 1 }
 0xa28   :  { %1679 = vsyncpa [#allocation4 + $0x1], 1 }

</bundles_post_ra>
